<compile_context>
chip_gen: v7x
topology: tpu7x:2x2x1
jax: 0.10.0
libtpu: 0.0.40
codegen_flags: <defaults>
</compile_context>

<pallas_src>
from functools import partial

import jax
import jax.numpy as jnp
import numpy as np
from jax.experimental import pallas as pl
from jax.experimental.pallas import tpu as pltpu


def _gather_kernel(ids_ref, w_hbm, out_ref, copy_sems, *, max_norm, tile_n):
    # ids_ref:   (N_pad,) int32 in SMEM (scalar prefetch)
    # w_hbm:     (V, D) embedding table, left in HBM (memory_space=pl.ANY)
    # out_ref:   (tile_n, D) output block in VMEM
    # copy_sems: (tile_n,) DMA completion semaphores
    base = pl.program_id(0) * tile_n

    # Start all row DMAs first so the DMA engine overlaps them, then wait.
    copies = []
    for r in range(tile_n):                      # static, unrolled
        row = ids_ref[base + r]
        cp = pltpu.make_async_copy(
            w_hbm.at[pl.ds(row, 1), :],          # one table row in HBM
            out_ref.at[pl.ds(r, 1), :],          # straight into the output tile
            copy_sems.at[r],
        )
        cp.start()
        copies.append(cp)
    for cp in copies:
        cp.wait()

    if max_norm is not None:
        # torch.renorm: rows with L2 norm > max_norm scaled by max_norm/(norm+1e-7)
        rows = out_ref[...].astype(jnp.float32)
        norm = jnp.sqrt(jnp.sum(rows * rows, axis=-1, keepdims=True))  # XLU reduce
        inv = pl.reciprocal(norm + 1e-7, approx=True)                  # EUP vrcp
        scale = jnp.where(norm > max_norm, max_norm * inv, 1.0)
        out_ref[...] = (rows * scale).astype(out_ref.dtype)


def simple_embedding(ids, weight, max_norm=None, *, tile_n=32):
    """Pallas equivalent of SimpleEmbedding.forward / .get (forward pass only)."""
    n = ids.shape[0]
    v, d = weight.shape

    # Clamp ids so an out-of-range id cannot trigger an OOB DMA fault.
    # (PyTorch's F.embedding would raise an IndexError instead.)
    ids32 = jnp.clip(ids.astype(jnp.int32), 0, v - 1)

    # Pad the id list to a multiple of tile_n; padded rows gather row 0 and are
    # sliced away afterwards.
    n_pad = pl.cdiv(n, tile_n) * tile_n
    if n_pad != n:
        ids32 = jnp.concatenate([ids32, jnp.zeros((n_pad - n,), jnp.int32)])

    out = pl.pallas_call(
        partial(_gather_kernel, max_norm=max_norm, tile_n=tile_n),
        out_shape=jax.ShapeDtypeStruct((n_pad, d), weight.dtype),
        grid_spec=pltpu.PrefetchScalarGridSpec(
            num_scalar_prefetch=1,                          # ids -> SMEM
            grid=(n_pad // tile_n,),
            in_specs=[pl.BlockSpec(memory_space=pl.ANY)],   # table stays in HBM
            out_specs=pl.BlockSpec((tile_n, d), lambda i, ids: (i, 0)),
            scratch_shapes=[pltpu.SemaphoreType.DMA((tile_n,))],
        ),
        compiler_params=pltpu.CompilerParams(
            dimension_semantics=("parallel",)),
    )(ids32, weight)

    return out[:n] if n_pad != n else out


def _reference(ids, weight, max_norm=None):
    rows = np.asarray(weight)[np.asarray(ids)]
    if max_norm is not None:
        norm = np.sqrt(np.sum(rows * rows, axis=-1, keepdims=True))
        scale = np.where(norm > max_norm, max_norm / (norm + 1e-7), 1.0)
        rows = rows * scale
    return rows


if __name__ == "__main__":
    key = jax.random.PRNGKey(0)
    k_w, k_i = jax.random.split(key)

    # Small shapes: vocab 64, lane-aligned embedding dim 128, 24 lookups
    # (deliberately not a multiple of the id tile, to exercise padding).
    V, D, N = 64, 128, 24
    weight = jax.random.normal(k_w, (V, D), dtype=jnp.float32)   # nn.Parameter
    ids = jax.random.randint(k_i, (N,), 0, V, dtype=jnp.int32)   # EntityList.to_tensor()

    ok = True

    # max_norm=None path (SimpleEmbedding default): the DMA gather is bit-exact.
    out = jax.block_until_ready(simple_embedding(ids, weight, max_norm=None, tile_n=16))
    ok &= bool(np.array_equal(np.asarray(out), _reference(ids, weight)))

    # max_norm path.  pl.reciprocal(approx=True) is a reduced-precision EUP op,
    # so compare with a correspondingly loose tolerance.
    out_mn = jax.block_until_ready(simple_embedding(ids, weight, max_norm=1.0, tile_n=16))
    ref_mn = _reference(ids, weight, max_norm=1.0)
    ok &= bool(np.allclose(np.asarray(out_mn), ref_mn, atol=1e-2, rtol=1e-2))

    # TODO(synk): F.embedding(sparse=True) gradient semantics and the in-place
    # weight renormalization side effect of max_norm are training-time concerns
    # with no forward-pass equivalent to implement here.
    if ok:
        print("KERNEL_OK")
</pallas_src>

<mosaic_0001>
module attributes {stable_mosaic.version = 11 : i64} {
  func.func @_gather_kernel(%arg0: i32, %arg1: memref<32xi32, #tpu.memory_space<smem>>, %arg2: memref<64x128xf32, #tpu.memory_space<any>>, %arg3: memref<16x128xf32, #tpu.memory_space<vmem>>, %arg4: memref<16x!tpu.dma_semaphore, #tpu.memory_space<semaphore_mem>>) attributes {dimension_semantics = [#tpu.dimension_semantics<parallel>], iteration_bounds = array<i64: 2>, scalar_prefetch = 1 : i64, scratch_operands = 1 : i64, tpu.core_type = #tpu.core_type<tc>, window_params = [{}, {transform_indices = @transform_1, window_bounds = array<i64: 16, 128>}]} {
    %c16_i32 = arith.constant 16 : i32
    %0 = arith.muli %arg0, %c16_i32 : i32
    %c0_i32 = arith.constant 0 : i32
    %1 = arith.addi %0, %c0_i32 : i32
    %2 = arith.index_cast %1 : i32 to index
    %3 = memref.load %arg1[%2] : memref<32xi32, #tpu.memory_space<smem>>
    %c0_i32_0 = arith.constant 0 : i32
    %c0_i32_1 = arith.constant 0 : i32
    %4 = tpu.memref_slice %arg2[%3, %c0_i32_1] : memref<64x128xf32, #tpu.memory_space<any>> -> memref<1x128xf32, #tpu.memory_space<any>>
    %c0_i32_2 = arith.constant 0 : i32
    %c0_i32_3 = arith.constant 0 : i32
    %5 = tpu.memref_slice %arg3[%c0_i32_2, %c0_i32_3] : memref<16x128xf32, #tpu.memory_space<vmem>> -> memref<1x128xf32, #tpu.memory_space<vmem>>
    %6 = tpu.memref_slice %arg4[%c0_i32_0] : memref<16x!tpu.dma_semaphore, #tpu.memory_space<semaphore_mem>> -> memref<1x!tpu.dma_semaphore, #tpu.memory_space<semaphore_mem>>
    %7 = tpu.memref_squeeze %6 : memref<1x!tpu.dma_semaphore, #tpu.memory_space<semaphore_mem>> -> memref<!tpu.dma_semaphore, #tpu.memory_space<semaphore_mem>>
    tpu.enqueue_dma source(%4 : memref<1x128xf32, #tpu.memory_space<any>>) target(%5 : memref<1x128xf32, #tpu.memory_space<vmem>>) target_semaphore(%7 : memref<!tpu.dma_semaphore, #tpu.memory_space<semaphore_mem>>)
    %c1_i32 = arith.constant 1 : i32
    %8 = arith.addi %0, %c1_i32 : i32
    %9 = arith.index_cast %8 : i32 to index
    %10 = memref.load %arg1[%9] : memref<32xi32, #tpu.memory_space<smem>>
    %c1_i32_4 = arith.constant 1 : i32
    %c0_i32_5 = arith.constant 0 : i32
    %11 = tpu.memref_slice %arg2[%10, %c0_i32_5] : memref<64x128xf32, #tpu.memory_space<any>> -> memref<1x128xf32, #tpu.memory_space<any>>
    %c1_i32_6 = arith.constant 1 : i32
    %c0_i32_7 = arith.constant 0 : i32
    %12 = tpu.memref_slice %arg3[%c1_i32_6, %c0_i32_7] : memref<16x128xf32, #tpu.memory_space<vmem>> -> memref<1x128xf32, #tpu.memory_space<vmem>>
    %13 = tpu.memref_slice %arg4[%c1_i32_4] : memref<16x!tpu.dma_semaphore, #tpu.memory_space<semaphore_mem>> -> memref<1x!tpu.dma_semaphore, #tpu.memory_space<semaphore_mem>>
    %14 = tpu.memref_squeeze %13 : memref<1x!tpu.dma_semaphore, #tpu.memory_space<semaphore_mem>> -> memref<!tpu.dma_semaphore, #tpu.memory_space<semaphore_mem>>
    tpu.enqueue_dma source(%11 : memref<1x128xf32, #tpu.memory_space<any>>) target(%12 : memref<1x128xf32, #tpu.memory_space<vmem>>) target_semaphore(%14 : memref<!tpu.dma_semaphore, #tpu.memory_space<semaphore_mem>>)
    %c2_i32 = arith.constant 2 : i32
    %15 = arith.addi %0, %c2_i32 : i32
    %16 = arith.index_cast %15 : i32 to index
    %17 = memref.load %arg1[%16] : memref<32xi32, #tpu.memory_space<smem>>
    %c2_i32_8 = arith.constant 2 : i32
    %c0_i32_9 = arith.constant 0 : i32
    %18 = tpu.memref_slice %arg2[%17, %c0_i32_9] : memref<64x128xf32, #tpu.memory_space<any>> -> memref<1x128xf32, #tpu.memory_space<any>>
    %c2_i32_10 = arith.constant 2 : i32
    %c0_i32_11 = arith.constant 0 : i32
    %19 = tpu.memref_slice %arg3[%c2_i32_10, %c0_i32_11] : memref<16x128xf32, #tpu.memory_space<vmem>> -> memref<1x128xf32, #tpu.memory_space<vmem>>
    %20 = tpu.memref_slice %arg4[%c2_i32_8] : memref<16x!tpu.dma_semaphore, #tpu.memory_space<semaphore_mem>> -> memref<1x!tpu.dma_semaphore, #tpu.memory_space<semaphore_mem>>
    %21 = tpu.memref_squeeze %20 : memref<1x!tpu.dma_semaphore, #tpu.memory_space<semaphore_mem>> -> memref<!tpu.dma_semaphore, #tpu.memory_space<semaphore_mem>>
    tpu.enqueue_dma source(%18 : memref<1x128xf32, #tpu.memory_space<any>>) target(%19 : memref<1x128xf32, #tpu.memory_space<vmem>>) target_semaphore(%21 : memref<!tpu.dma_semaphore, #tpu.memory_space<semaphore_mem>>)
    %c3_i32 = arith.constant 3 : i32
    %22 = arith.addi %0, %c3_i32 : i32
    %23 = arith.index_cast %22 : i32 to index
    %24 = memref.load %arg1[%23] : memref<32xi32, #tpu.memory_space<smem>>
    %c3_i32_12 = arith.constant 3 : i32
    %c0_i32_13 = arith.constant 0 : i32
    %25 = tpu.memref_slice %arg2[%24, %c0_i32_13] : memref<64x128xf32, #tpu.memory_space<any>> -> memref<1x128xf32, #tpu.memory_space<any>>
    %c3_i32_14 = arith.constant 3 : i32
    %c0_i32_15 = arith.constant 0 : i32
    %26 = tpu.memref_slice %arg3[%c3_i32_14, %c0_i32_15] : memref<16x128xf32, #tpu.memory_space<vmem>> -> memref<1x128xf32, #tpu.memory_space<vmem>>
    %27 = tpu.memref_slice %arg4[%c3_i32_12] : memref<16x!tpu.dma_semaphore, #tpu.memory_space<semaphore_mem>> -> memref<1x!tpu.dma_semaphore, #tpu.memory_space<semaphore_mem>>
    %28 = tpu.memref_squeeze %27 : memref<1x!tpu.dma_semaphore, #tpu.memory_space<semaphore_mem>> -> memref<!tpu.dma_semaphore, #tpu.memory_space<semaphore_mem>>
    tpu.enqueue_dma source(%25 : memref<1x128xf32, #tpu.memory_space<any>>) target(%26 : memref<1x128xf32, #tpu.memory_space<vmem>>) target_semaphore(%28 : memref<!tpu.dma_semaphore, #tpu.memory_space<semaphore_mem>>)
    %c4_i32 = arith.constant 4 : i32
    %29 = arith.addi %0, %c4_i32 : i32
    %30 = arith.index_cast %29 : i32 to index
    %31 = memref.load %arg1[%30] : memref<32xi32, #tpu.memory_space<smem>>
    %c4_i32_16 = arith.constant 4 : i32
    %c0_i32_17 = arith.constant 0 : i32
    %32 = tpu.memref_slice %arg2[%31, %c0_i32_17] : memref<64x128xf32, #tpu.memory_space<any>> -> memref<1x128xf32, #tpu.memory_space<any>>
    %c4_i32_18 = arith.constant 4 : i32
    %c0_i32_19 = arith.constant 0 : i32
    %33 = tpu.memref_slice %arg3[%c4_i32_18, %c0_i32_19] : memref<16x128xf32, #tpu.memory_space<vmem>> -> memref<1x128xf32, #tpu.memory_space<vmem>>
    %34 = tpu.memref_slice %arg4[%c4_i32_16] : memref<16x!tpu.dma_semaphore, #tpu.memory_space<semaphore_mem>> -> memref<1x!tpu.dma_semaphore, #tpu.memory_space<semaphore_mem>>
    %35 = tpu.memref_squeeze %34 : memref<1x!tpu.dma_semaphore, #tpu.memory_space<semaphore_mem>> -> memref<!tpu.dma_semaphore, #tpu.memory_space<semaphore_mem>>
    tpu.enqueue_dma source(%32 : memref<1x128xf32, #tpu.memory_space<any>>) target(%33 : memref<1x128xf32, #tpu.memory_space<vmem>>) target_semaphore(%35 : memref<!tpu.dma_semaphore, #tpu.memory_space<semaphore_mem>>)
    %c5_i32 = arith.constant 5 : i32
    %36 = arith.addi %0, %c5_i32 : i32
    %37 = arith.index_cast %36 : i32 to index
    %38 = memref.load %arg1[%37] : memref<32xi32, #tpu.memory_space<smem>>
    %c5_i32_20 = arith.constant 5 : i32
    %c0_i32_21 = arith.constant 0 : i32
    %39 = tpu.memref_slice %arg2[%38, %c0_i32_21] : memref<64x128xf32, #tpu.memory_space<any>> -> memref<1x128xf32, #tpu.memory_space<any>>
    %c5_i32_22 = arith.constant 5 : i32
    %c0_i32_23 = arith.constant 0 : i32
    %40 = tpu.memref_slice %arg3[%c5_i32_22, %c0_i32_23] : memref<16x128xf32, #tpu.memory_space<vmem>> -> memref<1x128xf32, #tpu.memory_space<vmem>>
    %41 = tpu.memref_slice %arg4[%c5_i32_20] : memref<16x!tpu.dma_semaphore, #tpu.memory_space<semaphore_mem>> -> memref<1x!tpu.dma_semaphore, #tpu.memory_space<semaphore_mem>>
    %42 = tpu.memref_squeeze %41 : memref<1x!tpu.dma_semaphore, #tpu.memory_space<semaphore_mem>> -> memref<!tpu.dma_semaphore, #tpu.memory_space<semaphore_mem>>
    tpu.enqueue_dma source(%39 : memref<1x128xf32, #tpu.memory_space<any>>) target(%40 : memref<1x128xf32, #tpu.memory_space<vmem>>) target_semaphore(%42 : memref<!tpu.dma_semaphore, #tpu.memory_space<semaphore_mem>>)
    %c6_i32 = arith.constant 6 : i32
    %43 = arith.addi %0, %c6_i32 : i32
    %44 = arith.index_cast %43 : i32 to index
    %45 = memref.load %arg1[%44] : memref<32xi32, #tpu.memory_space<smem>>
    %c6_i32_24 = arith.constant 6 : i32
    %c0_i32_25 = arith.constant 0 : i32
    %46 = tpu.memref_slice %arg2[%45, %c0_i32_25] : memref<64x128xf32, #tpu.memory_space<any>> -> memref<1x128xf32, #tpu.memory_space<any>>
    %c6_i32_26 = arith.constant 6 : i32
    %c0_i32_27 = arith.constant 0 : i32
    %47 = tpu.memref_slice %arg3[%c6_i32_26, %c0_i32_27] : memref<16x128xf32, #tpu.memory_space<vmem>> -> memref<1x128xf32, #tpu.memory_space<vmem>>
    %48 = tpu.memref_slice %arg4[%c6_i32_24] : memref<16x!tpu.dma_semaphore, #tpu.memory_space<semaphore_mem>> -> memref<1x!tpu.dma_semaphore, #tpu.memory_space<semaphore_mem>>
    %49 = tpu.memref_squeeze %48 : memref<1x!tpu.dma_semaphore, #tpu.memory_space<semaphore_mem>> -> memref<!tpu.dma_semaphore, #tpu.memory_space<semaphore_mem>>
    tpu.enqueue_dma source(%46 : memref<1x128xf32, #tpu.memory_space<any>>) target(%47 : memref<1x128xf32, #tpu.memory_space<vmem>>) target_semaphore(%49 : memref<!tpu.dma_semaphore, #tpu.memory_space<semaphore_mem>>)
    %c7_i32 = arith.constant 7 : i32
    %50 = arith.addi %0, %c7_i32 : i32
    %51 = arith.index_cast %50 : i32 to index
    %52 = memref.load %arg1[%51] : memref<32xi32, #tpu.memory_space<smem>>
    %c7_i32_28 = arith.constant 7 : i32
    %c0_i32_29 = arith.constant 0 : i32
    %53 = tpu.memref_slice %arg2[%52, %c0_i32_29] : memref<64x128xf32, #tpu.memory_space<any>> -> memref<1x128xf32, #tpu.memory_space<any>>
    %c7_i32_30 = arith.constant 7 : i32
    %c0_i32_31 = arith.constant 0 : i32
    %54 = tpu.memref_slice %arg3[%c7_i32_30, %c0_i32_31] : memref<16x128xf32, #tpu.memory_space<vmem>> -> memref<1x128xf32, #tpu.memory_space<vmem>>
    %55 = tpu.memref_slice %arg4[%c7_i32_28] : memref<16x!tpu.dma_semaphore, #tpu.memory_space<semaphore_mem>> -> memref<1x!tpu.dma_semaphore, #tpu.memory_space<semaphore_mem>>
    %56 = tpu.memref_squeeze %55 : memref<1x!tpu.dma_semaphore, #tpu.memory_space<semaphore_mem>> -> memref<!tpu.dma_semaphore, #tpu.memory_space<semaphore_mem>>
    tpu.enqueue_dma source(%53 : memref<1x128xf32, #tpu.memory_space<any>>) target(%54 : memref<1x128xf32, #tpu.memory_space<vmem>>) target_semaphore(%56 : memref<!tpu.dma_semaphore, #tpu.memory_space<semaphore_mem>>)
    %c8_i32 = arith.constant 8 : i32
    %57 = arith.addi %0, %c8_i32 : i32
    %58 = arith.index_cast %57 : i32 to index
    %59 = memref.load %arg1[%58] : memref<32xi32, #tpu.memory_space<smem>>
    %c8_i32_32 = arith.constant 8 : i32
    %c0_i32_33 = arith.constant 0 : i32
    %60 = tpu.memref_slice %arg2[%59, %c0_i32_33] : memref<64x128xf32, #tpu.memory_space<any>> -> memref<1x128xf32, #tpu.memory_space<any>>
    %c8_i32_34 = arith.constant 8 : i32
    %c0_i32_35 = arith.constant 0 : i32
    %61 = tpu.memref_slice %arg3[%c8_i32_34, %c0_i32_35] : memref<16x128xf32, #tpu.memory_space<vmem>> -> memref<1x128xf32, #tpu.memory_space<vmem>>
    %62 = tpu.memref_slice %arg4[%c8_i32_32] : memref<16x!tpu.dma_semaphore, #tpu.memory_space<semaphore_mem>> -> memref<1x!tpu.dma_semaphore, #tpu.memory_space<semaphore_mem>>
    %63 = tpu.memref_squeeze %62 : memref<1x!tpu.dma_semaphore, #tpu.memory_space<semaphore_mem>> -> memref<!tpu.dma_semaphore, #tpu.memory_space<semaphore_mem>>
    tpu.enqueue_dma source(%60 : memref<1x128xf32, #tpu.memory_space<any>>) target(%61 : memref<1x128xf32, #tpu.memory_space<vmem>>) target_semaphore(%63 : memref<!tpu.dma_semaphore, #tpu.memory_space<semaphore_mem>>)
    %c9_i32 = arith.constant 9 : i32
    %64 = arith.addi %0, %c9_i32 : i32
    %65 = arith.index_cast %64 : i32 to index
    %66 = memref.load %arg1[%65] : memref<32xi32, #tpu.memory_space<smem>>
    %c9_i32_36 = arith.constant 9 : i32
    %c0_i32_37 = arith.constant 0 : i32
    %67 = tpu.memref_slice %arg2[%66, %c0_i32_37] : memref<64x128xf32, #tpu.memory_space<any>> -> memref<1x128xf32, #tpu.memory_space<any>>
    %c9_i32_38 = arith.constant 9 : i32
    %c0_i32_39 = arith.constant 0 : i32
    %68 = tpu.memref_slice %arg3[%c9_i32_38, %c0_i32_39] : memref<16x128xf32, #tpu.memory_space<vmem>> -> memref<1x128xf32, #tpu.memory_space<vmem>>
    %69 = tpu.memref_slice %arg4[%c9_i32_36] : memref<16x!tpu.dma_semaphore, #tpu.memory_space<semaphore_mem>> -> memref<1x!tpu.dma_semaphore, #tpu.memory_space<semaphore_mem>>
    %70 = tpu.memref_squeeze %69 : memref<1x!tpu.dma_semaphore, #tpu.memory_space<semaphore_mem>> -> memref<!tpu.dma_semaphore, #tpu.memory_space<semaphore_mem>>
    tpu.enqueue_dma source(%67 : memref<1x128xf32, #tpu.memory_space<any>>) target(%68 : memref<1x128xf32, #tpu.memory_space<vmem>>) target_semaphore(%70 : memref<!tpu.dma_semaphore, #tpu.memory_space<semaphore_mem>>)
    %c10_i32 = arith.constant 10 : i32
    %71 = arith.addi %0, %c10_i32 : i32
    %72 = arith.index_cast %71 : i32 to index
    %73 = memref.load %arg1[%72] : memref<32xi32, #tpu.memory_space<smem>>
    %c10_i32_40 = arith.constant 10 : i32
    %c0_i32_41 = arith.constant 0 : i32
    %74 = tpu.memref_slice %arg2[%73, %c0_i32_41] : memref<64x128xf32, #tpu.memory_space<any>> -> memref<1x128xf32, #tpu.memory_space<any>>
    %c10_i32_42 = arith.constant 10 : i32
    %c0_i32_43 = arith.constant 0 : i32
    %75 = tpu.memref_slice %arg3[%c10_i32_42, %c0_i32_43] : memref<16x128xf32, #tpu.memory_space<vmem>> -> memref<1x128xf32, #tpu.memory_space<vmem>>
    %76 = tpu.memref_slice %arg4[%c10_i32_40] : memref<16x!tpu.dma_semaphore, #tpu.memory_space<semaphore_mem>> -> memref<1x!tpu.dma_semaphore, #tpu.memory_space<semaphore_mem>>
    %77 = tpu.memref_squeeze %76 : memref<1x!tpu.dma_semaphore, #tpu.memory_space<semaphore_mem>> -> memref<!tpu.dma_semaphore, #tpu.memory_space<semaphore_mem>>
    tpu.enqueue_dma source(%74 : memref<1x128xf32, #tpu.memory_space<any>>) target(%75 : memref<1x128xf32, #tpu.memory_space<vmem>>) target_semaphore(%77 : memref<!tpu.dma_semaphore, #tpu.memory_space<semaphore_mem>>)
    %c11_i32 = arith.constant 11 : i32
    %78 = arith.addi %0, %c11_i32 : i32
    %79 = arith.index_cast %78 : i32 to index
    %80 = memref.load %arg1[%79] : memref<32xi32, #tpu.memory_space<smem>>
    %c11_i32_44 = arith.constant 11 : i32
    %c0_i32_45 = arith.constant 0 : i32
    %81 = tpu.memref_slice %arg2[%80, %c0_i32_45] : memref<64x128xf32, #tpu.memory_space<any>> -> memref<1x128xf32, #tpu.memory_space<any>>
    %c11_i32_46 = arith.constant 11 : i32
    %c0_i32_47 = arith.constant 0 : i32
    %82 = tpu.memref_slice %arg3[%c11_i32_46, %c0_i32_47] : memref<16x128xf32, #tpu.memory_space<vmem>> -> memref<1x128xf32, #tpu.memory_space<vmem>>
    %83 = tpu.memref_slice %arg4[%c11_i32_44] : memref<16x!tpu.dma_semaphore, #tpu.memory_space<semaphore_mem>> -> memref<1x!tpu.dma_semaphore, #tpu.memory_space<semaphore_mem>>
    %84 = tpu.memref_squeeze %83 : memref<1x!tpu.dma_semaphore, #tpu.memory_space<semaphore_mem>> -> memref<!tpu.dma_semaphore, #tpu.memory_space<semaphore_mem>>
    tpu.enqueue_dma source(%81 : memref<1x128xf32, #tpu.memory_space<any>>) target(%82 : memref<1x128xf32, #tpu.memory_space<vmem>>) target_semaphore(%84 : memref<!tpu.dma_semaphore, #tpu.memory_space<semaphore_mem>>)
    %c12_i32 = arith.constant 12 : i32
    %85 = arith.addi %0, %c12_i32 : i32
    %86 = arith.index_cast %85 : i32 to index
    %87 = memref.load %arg1[%86] : memref<32xi32, #tpu.memory_space<smem>>
    %c12_i32_48 = arith.constant 12 : i32
    %c0_i32_49 = arith.constant 0 : i32
    %88 = tpu.memref_slice %arg2[%87, %c0_i32_49] : memref<64x128xf32, #tpu.memory_space<any>> -> memref<1x128xf32, #tpu.memory_space<any>>
    %c12_i32_50 = arith.constant 12 : i32
    %c0_i32_51 = arith.constant 0 : i32
    %89 = tpu.memref_slice %arg3[%c12_i32_50, %c0_i32_51] : memref<16x128xf32, #tpu.memory_space<vmem>> -> memref<1x128xf32, #tpu.memory_space<vmem>>
    %90 = tpu.memref_slice %arg4[%c12_i32_48] : memref<16x!tpu.dma_semaphore, #tpu.memory_space<semaphore_mem>> -> memref<1x!tpu.dma_semaphore, #tpu.memory_space<semaphore_mem>>
    %91 = tpu.memref_squeeze %90 : memref<1x!tpu.dma_semaphore, #tpu.memory_space<semaphore_mem>> -> memref<!tpu.dma_semaphore, #tpu.memory_space<semaphore_mem>>
    tpu.enqueue_dma source(%88 : memref<1x128xf32, #tpu.memory_space<any>>) target(%89 : memref<1x128xf32, #tpu.memory_space<vmem>>) target_semaphore(%91 : memref<!tpu.dma_semaphore, #tpu.memory_space<semaphore_mem>>)
    %c13_i32 = arith.constant 13 : i32
    %92 = arith.addi %0, %c13_i32 : i32
    %93 = arith.index_cast %92 : i32 to index
    %94 = memref.load %arg1[%93] : memref<32xi32, #tpu.memory_space<smem>>
    %c13_i32_52 = arith.constant 13 : i32
    %c0_i32_53 = arith.constant 0 : i32
    %95 = tpu.memref_slice %arg2[%94, %c0_i32_53] : memref<64x128xf32, #tpu.memory_space<any>> -> memref<1x128xf32, #tpu.memory_space<any>>
    %c13_i32_54 = arith.constant 13 : i32
    %c0_i32_55 = arith.constant 0 : i32
    %96 = tpu.memref_slice %arg3[%c13_i32_54, %c0_i32_55] : memref<16x128xf32, #tpu.memory_space<vmem>> -> memref<1x128xf32, #tpu.memory_space<vmem>>
    %97 = tpu.memref_slice %arg4[%c13_i32_52] : memref<16x!tpu.dma_semaphore, #tpu.memory_space<semaphore_mem>> -> memref<1x!tpu.dma_semaphore, #tpu.memory_space<semaphore_mem>>
    %98 = tpu.memref_squeeze %97 : memref<1x!tpu.dma_semaphore, #tpu.memory_space<semaphore_mem>> -> memref<!tpu.dma_semaphore, #tpu.memory_space<semaphore_mem>>
    tpu.enqueue_dma source(%95 : memref<1x128xf32, #tpu.memory_space<any>>) target(%96 : memref<1x128xf32, #tpu.memory_space<vmem>>) target_semaphore(%98 : memref<!tpu.dma_semaphore, #tpu.memory_space<semaphore_mem>>)
    %c14_i32 = arith.constant 14 : i32
    %99 = arith.addi %0, %c14_i32 : i32
    %100 = arith.index_cast %99 : i32 to index
    %101 = memref.load %arg1[%100] : memref<32xi32, #tpu.memory_space<smem>>
    %c14_i32_56 = arith.constant 14 : i32
    %c0_i32_57 = arith.constant 0 : i32
    %102 = tpu.memref_slice %arg2[%101, %c0_i32_57] : memref<64x128xf32, #tpu.memory_space<any>> -> memref<1x128xf32, #tpu.memory_space<any>>
    %c14_i32_58 = arith.constant 14 : i32
    %c0_i32_59 = arith.constant 0 : i32
    %103 = tpu.memref_slice %arg3[%c14_i32_58, %c0_i32_59] : memref<16x128xf32, #tpu.memory_space<vmem>> -> memref<1x128xf32, #tpu.memory_space<vmem>>
    %104 = tpu.memref_slice %arg4[%c14_i32_56] : memref<16x!tpu.dma_semaphore, #tpu.memory_space<semaphore_mem>> -> memref<1x!tpu.dma_semaphore, #tpu.memory_space<semaphore_mem>>
    %105 = tpu.memref_squeeze %104 : memref<1x!tpu.dma_semaphore, #tpu.memory_space<semaphore_mem>> -> memref<!tpu.dma_semaphore, #tpu.memory_space<semaphore_mem>>
    tpu.enqueue_dma source(%102 : memref<1x128xf32, #tpu.memory_space<any>>) target(%103 : memref<1x128xf32, #tpu.memory_space<vmem>>) target_semaphore(%105 : memref<!tpu.dma_semaphore, #tpu.memory_space<semaphore_mem>>)
    %c15_i32 = arith.constant 15 : i32
    %106 = arith.addi %0, %c15_i32 : i32
    %107 = arith.index_cast %106 : i32 to index
    %108 = memref.load %arg1[%107] : memref<32xi32, #tpu.memory_space<smem>>
    %c15_i32_60 = arith.constant 15 : i32
    %c0_i32_61 = arith.constant 0 : i32
    %109 = tpu.memref_slice %arg2[%108, %c0_i32_61] : memref<64x128xf32, #tpu.memory_space<any>> -> memref<1x128xf32, #tpu.memory_space<any>>
    %c15_i32_62 = arith.constant 15 : i32
    %c0_i32_63 = arith.constant 0 : i32
    %110 = tpu.memref_slice %arg3[%c15_i32_62, %c0_i32_63] : memref<16x128xf32, #tpu.memory_space<vmem>> -> memref<1x128xf32, #tpu.memory_space<vmem>>
    %111 = tpu.memref_slice %arg4[%c15_i32_60] : memref<16x!tpu.dma_semaphore, #tpu.memory_space<semaphore_mem>> -> memref<1x!tpu.dma_semaphore, #tpu.memory_space<semaphore_mem>>
    %112 = tpu.memref_squeeze %111 : memref<1x!tpu.dma_semaphore, #tpu.memory_space<semaphore_mem>> -> memref<!tpu.dma_semaphore, #tpu.memory_space<semaphore_mem>>
    tpu.enqueue_dma source(%109 : memref<1x128xf32, #tpu.memory_space<any>>) target(%110 : memref<1x128xf32, #tpu.memory_space<vmem>>) target_semaphore(%112 : memref<!tpu.dma_semaphore, #tpu.memory_space<semaphore_mem>>)
    %c0_i32_64 = arith.constant 0 : i32
    %c0_i32_65 = arith.constant 0 : i32
    %113 = tpu.memref_slice %arg2[%3, %c0_i32_65] : memref<64x128xf32, #tpu.memory_space<any>> -> memref<1x128xf32, #tpu.memory_space<any>>
    %c0_i32_66 = arith.constant 0 : i32
    %c0_i32_67 = arith.constant 0 : i32
    %114 = tpu.memref_slice %arg3[%c0_i32_66, %c0_i32_67] : memref<16x128xf32, #tpu.memory_space<vmem>> -> memref<1x128xf32, #tpu.memory_space<vmem>>
    %115 = tpu.memref_slice %arg4[%c0_i32_64] : memref<16x!tpu.dma_semaphore, #tpu.memory_space<semaphore_mem>> -> memref<1x!tpu.dma_semaphore, #tpu.memory_space<semaphore_mem>>
    %116 = tpu.memref_squeeze %115 : memref<1x!tpu.dma_semaphore, #tpu.memory_space<semaphore_mem>> -> memref<!tpu.dma_semaphore, #tpu.memory_space<semaphore_mem>>
    tpu.wait_dma2 semaphore(%116 : memref<!tpu.dma_semaphore, #tpu.memory_space<semaphore_mem>>) src(%113 : memref<1x128xf32, #tpu.memory_space<any>>) dst(%114 : memref<1x128xf32, #tpu.memory_space<vmem>>)
    %c1_i32_68 = arith.constant 1 : i32
    %c0_i32_69 = arith.constant 0 : i32
    %117 = tpu.memref_slice %arg2[%10, %c0_i32_69] : memref<64x128xf32, #tpu.memory_space<any>> -> memref<1x128xf32, #tpu.memory_space<any>>
    %c1_i32_70 = arith.constant 1 : i32
    %c0_i32_71 = arith.constant 0 : i32
    %118 = tpu.memref_slice %arg3[%c1_i32_70, %c0_i32_71] : memref<16x128xf32, #tpu.memory_space<vmem>> -> memref<1x128xf32, #tpu.memory_space<vmem>>
    %119 = tpu.memref_slice %arg4[%c1_i32_68] : memref<16x!tpu.dma_semaphore, #tpu.memory_space<semaphore_mem>> -> memref<1x!tpu.dma_semaphore, #tpu.memory_space<semaphore_mem>>
    %120 = tpu.memref_squeeze %119 : memref<1x!tpu.dma_semaphore, #tpu.memory_space<semaphore_mem>> -> memref<!tpu.dma_semaphore, #tpu.memory_space<semaphore_mem>>
    tpu.wait_dma2 semaphore(%120 : memref<!tpu.dma_semaphore, #tpu.memory_space<semaphore_mem>>) src(%117 : memref<1x128xf32, #tpu.memory_space<any>>) dst(%118 : memref<1x128xf32, #tpu.memory_space<vmem>>)
    %c2_i32_72 = arith.constant 2 : i32
    %c0_i32_73 = arith.constant 0 : i32
    %121 = tpu.memref_slice %arg2[%17, %c0_i32_73] : memref<64x128xf32, #tpu.memory_space<any>> -> memref<1x128xf32, #tpu.memory_space<any>>
    %c2_i32_74 = arith.constant 2 : i32
    %c0_i32_75 = arith.constant 0 : i32
    %122 = tpu.memref_slice %arg3[%c2_i32_74, %c0_i32_75] : memref<16x128xf32, #tpu.memory_space<vmem>> -> memref<1x128xf32, #tpu.memory_space<vmem>>
    %123 = tpu.memref_slice %arg4[%c2_i32_72] : memref<16x!tpu.dma_semaphore, #tpu.memory_space<semaphore_mem>> -> memref<1x!tpu.dma_semaphore, #tpu.memory_space<semaphore_mem>>
    %124 = tpu.memref_squeeze %123 : memref<1x!tpu.dma_semaphore, #tpu.memory_space<semaphore_mem>> -> memref<!tpu.dma_semaphore, #tpu.memory_space<semaphore_mem>>
    tpu.wait_dma2 semaphore(%124 : memref<!tpu.dma_semaphore, #tpu.memory_space<semaphore_mem>>) src(%121 : memref<1x128xf32, #tpu.memory_space<any>>) dst(%122 : memref<1x128xf32, #tpu.memory_space<vmem>>)
    %c3_i32_76 = arith.constant 3 : i32
    %c0_i32_77 = arith.constant 0 : i32
    %125 = tpu.memref_slice %arg2[%24, %c0_i32_77] : memref<64x128xf32, #tpu.memory_space<any>> -> memref<1x128xf32, #tpu.memory_space<any>>
    %c3_i32_78 = arith.constant 3 : i32
    %c0_i32_79 = arith.constant 0 : i32
    %126 = tpu.memref_slice %arg3[%c3_i32_78, %c0_i32_79] : memref<16x128xf32, #tpu.memory_space<vmem>> -> memref<1x128xf32, #tpu.memory_space<vmem>>
    %127 = tpu.memref_slice %arg4[%c3_i32_76] : memref<16x!tpu.dma_semaphore, #tpu.memory_space<semaphore_mem>> -> memref<1x!tpu.dma_semaphore, #tpu.memory_space<semaphore_mem>>
    %128 = tpu.memref_squeeze %127 : memref<1x!tpu.dma_semaphore, #tpu.memory_space<semaphore_mem>> -> memref<!tpu.dma_semaphore, #tpu.memory_space<semaphore_mem>>
    tpu.wait_dma2 semaphore(%128 : memref<!tpu.dma_semaphore, #tpu.memory_space<semaphore_mem>>) src(%125 : memref<1x128xf32, #tpu.memory_space<any>>) dst(%126 : memref<1x128xf32, #tpu.memory_space<vmem>>)
    %c4_i32_80 = arith.constant 4 : i32
    %c0_i32_81 = arith.constant 0 : i32
    %129 = tpu.memref_slice %arg2[%31, %c0_i32_81] : memref<64x128xf32, #tpu.memory_space<any>> -> memref<1x128xf32, #tpu.memory_space<any>>
    %c4_i32_82 = arith.constant 4 : i32
    %c0_i32_83 = arith.constant 0 : i32
    %130 = tpu.memref_slice %arg3[%c4_i32_82, %c0_i32_83] : memref<16x128xf32, #tpu.memory_space<vmem>> -> memref<1x128xf32, #tpu.memory_space<vmem>>
    %131 = tpu.memref_slice %arg4[%c4_i32_80] : memref<16x!tpu.dma_semaphore, #tpu.memory_space<semaphore_mem>> -> memref<1x!tpu.dma_semaphore, #tpu.memory_space<semaphore_mem>>
    %132 = tpu.memref_squeeze %131 : memref<1x!tpu.dma_semaphore, #tpu.memory_space<semaphore_mem>> -> memref<!tpu.dma_semaphore, #tpu.memory_space<semaphore_mem>>
    tpu.wait_dma2 semaphore(%132 : memref<!tpu.dma_semaphore, #tpu.memory_space<semaphore_mem>>) src(%129 : memref<1x128xf32, #tpu.memory_space<any>>) dst(%130 : memref<1x128xf32, #tpu.memory_space<vmem>>)
    %c5_i32_84 = arith.constant 5 : i32
    %c0_i32_85 = arith.constant 0 : i32
    %133 = tpu.memref_slice %arg2[%38, %c0_i32_85] : memref<64x128xf32, #tpu.memory_space<any>> -> memref<1x128xf32, #tpu.memory_space<any>>
    %c5_i32_86 = arith.constant 5 : i32
    %c0_i32_87 = arith.constant 0 : i32
    %134 = tpu.memref_slice %arg3[%c5_i32_86, %c0_i32_87] : memref<16x128xf32, #tpu.memory_space<vmem>> -> memref<1x128xf32, #tpu.memory_space<vmem>>
    %135 = tpu.memref_slice %arg4[%c5_i32_84] : memref<16x!tpu.dma_semaphore, #tpu.memory_space<semaphore_mem>> -> memref<1x!tpu.dma_semaphore, #tpu.memory_space<semaphore_mem>>
    %136 = tpu.memref_squeeze %135 : memref<1x!tpu.dma_semaphore, #tpu.memory_space<semaphore_mem>> -> memref<!tpu.dma_semaphore, #tpu.memory_space<semaphore_mem>>
    tpu.wait_dma2 semaphore(%136 : memref<!tpu.dma_semaphore, #tpu.memory_space<semaphore_mem>>) src(%133 : memref<1x128xf32, #tpu.memory_space<any>>) dst(%134 : memref<1x128xf32, #tpu.memory_space<vmem>>)
    %c6_i32_88 = arith.constant 6 : i32
    %c0_i32_89 = arith.constant 0 : i32
    %137 = tpu.memref_slice %arg2[%45, %c0_i32_89] : memref<64x128xf32, #tpu.memory_space<any>> -> memref<1x128xf32, #tpu.memory_space<any>>
    %c6_i32_90 = arith.constant 6 : i32
    %c0_i32_91 = arith.constant 0 : i32
    %138 = tpu.memref_slice %arg3[%c6_i32_90, %c0_i32_91] : memref<16x128xf32, #tpu.memory_space<vmem>> -> memref<1x128xf32, #tpu.memory_space<vmem>>
    %139 = tpu.memref_slice %arg4[%c6_i32_88] : memref<16x!tpu.dma_semaphore, #tpu.memory_space<semaphore_mem>> -> memref<1x!tpu.dma_semaphore, #tpu.memory_space<semaphore_mem>>
    %140 = tpu.memref_squeeze %139 : memref<1x!tpu.dma_semaphore, #tpu.memory_space<semaphore_mem>> -> memref<!tpu.dma_semaphore, #tpu.memory_space<semaphore_mem>>
    tpu.wait_dma2 semaphore(%140 : memref<!tpu.dma_semaphore, #tpu.memory_space<semaphore_mem>>) src(%137 : memref<1x128xf32, #tpu.memory_space<any>>) dst(%138 : memref<1x128xf32, #tpu.memory_space<vmem>>)
    %c7_i32_92 = arith.constant 7 : i32
    %c0_i32_93 = arith.constant 0 : i32
    %141 = tpu.memref_slice %arg2[%52, %c0_i32_93] : memref<64x128xf32, #tpu.memory_space<any>> -> memref<1x128xf32, #tpu.memory_space<any>>
    %c7_i32_94 = arith.constant 7 : i32
    %c0_i32_95 = arith.constant 0 : i32
    %142 = tpu.memref_slice %arg3[%c7_i32_94, %c0_i32_95] : memref<16x128xf32, #tpu.memory_space<vmem>> -> memref<1x128xf32, #tpu.memory_space<vmem>>
    %143 = tpu.memref_slice %arg4[%c7_i32_92] : memref<16x!tpu.dma_semaphore, #tpu.memory_space<semaphore_mem>> -> memref<1x!tpu.dma_semaphore, #tpu.memory_space<semaphore_mem>>
    %144 = tpu.memref_squeeze %143 : memref<1x!tpu.dma_semaphore, #tpu.memory_space<semaphore_mem>> -> memref<!tpu.dma_semaphore, #tpu.memory_space<semaphore_mem>>
    tpu.wait_dma2 semaphore(%144 : memref<!tpu.dma_semaphore, #tpu.memory_space<semaphore_mem>>) src(%141 : memref<1x128xf32, #tpu.memory_space<any>>) dst(%142 : memref<1x128xf32, #tpu.memory_space<vmem>>)
    %c8_i32_96 = arith.constant 8 : i32
    %c0_i32_97 = arith.constant 0 : i32
    %145 = tpu.memref_slice %arg2[%59, %c0_i32_97] : memref<64x128xf32, #tpu.memory_space<any>> -> memref<1x128xf32, #tpu.memory_space<any>>
    %c8_i32_98 = arith.constant 8 : i32
    %c0_i32_99 = arith.constant 0 : i32
    %146 = tpu.memref_slice %arg3[%c8_i32_98, %c0_i32_99] : memref<16x128xf32, #tpu.memory_space<vmem>> -> memref<1x128xf32, #tpu.memory_space<vmem>>
    %147 = tpu.memref_slice %arg4[%c8_i32_96] : memref<16x!tpu.dma_semaphore, #tpu.memory_space<semaphore_mem>> -> memref<1x!tpu.dma_semaphore, #tpu.memory_space<semaphore_mem>>
    %148 = tpu.memref_squeeze %147 : memref<1x!tpu.dma_semaphore, #tpu.memory_space<semaphore_mem>> -> memref<!tpu.dma_semaphore, #tpu.memory_space<semaphore_mem>>
    tpu.wait_dma2 semaphore(%148 : memref<!tpu.dma_semaphore, #tpu.memory_space<semaphore_mem>>) src(%145 : memref<1x128xf32, #tpu.memory_space<any>>) dst(%146 : memref<1x128xf32, #tpu.memory_space<vmem>>)
    %c9_i32_100 = arith.constant 9 : i32
    %c0_i32_101 = arith.constant 0 : i32
    %149 = tpu.memref_slice %arg2[%66, %c0_i32_101] : memref<64x128xf32, #tpu.memory_space<any>> -> memref<1x128xf32, #tpu.memory_space<any>>
    %c9_i32_102 = arith.constant 9 : i32
    %c0_i32_103 = arith.constant 0 : i32
    %150 = tpu.memref_slice %arg3[%c9_i32_102, %c0_i32_103] : memref<16x128xf32, #tpu.memory_space<vmem>> -> memref<1x128xf32, #tpu.memory_space<vmem>>
    %151 = tpu.memref_slice %arg4[%c9_i32_100] : memref<16x!tpu.dma_semaphore, #tpu.memory_space<semaphore_mem>> -> memref<1x!tpu.dma_semaphore, #tpu.memory_space<semaphore_mem>>
    %152 = tpu.memref_squeeze %151 : memref<1x!tpu.dma_semaphore, #tpu.memory_space<semaphore_mem>> -> memref<!tpu.dma_semaphore, #tpu.memory_space<semaphore_mem>>
    tpu.wait_dma2 semaphore(%152 : memref<!tpu.dma_semaphore, #tpu.memory_space<semaphore_mem>>) src(%149 : memref<1x128xf32, #tpu.memory_space<any>>) dst(%150 : memref<1x128xf32, #tpu.memory_space<vmem>>)
    %c10_i32_104 = arith.constant 10 : i32
    %c0_i32_105 = arith.constant 0 : i32
    %153 = tpu.memref_slice %arg2[%73, %c0_i32_105] : memref<64x128xf32, #tpu.memory_space<any>> -> memref<1x128xf32, #tpu.memory_space<any>>
    %c10_i32_106 = arith.constant 10 : i32
    %c0_i32_107 = arith.constant 0 : i32
    %154 = tpu.memref_slice %arg3[%c10_i32_106, %c0_i32_107] : memref<16x128xf32, #tpu.memory_space<vmem>> -> memref<1x128xf32, #tpu.memory_space<vmem>>
    %155 = tpu.memref_slice %arg4[%c10_i32_104] : memref<16x!tpu.dma_semaphore, #tpu.memory_space<semaphore_mem>> -> memref<1x!tpu.dma_semaphore, #tpu.memory_space<semaphore_mem>>
    %156 = tpu.memref_squeeze %155 : memref<1x!tpu.dma_semaphore, #tpu.memory_space<semaphore_mem>> -> memref<!tpu.dma_semaphore, #tpu.memory_space<semaphore_mem>>
    tpu.wait_dma2 semaphore(%156 : memref<!tpu.dma_semaphore, #tpu.memory_space<semaphore_mem>>) src(%153 : memref<1x128xf32, #tpu.memory_space<any>>) dst(%154 : memref<1x128xf32, #tpu.memory_space<vmem>>)
    %c11_i32_108 = arith.constant 11 : i32
    %c0_i32_109 = arith.constant 0 : i32
    %157 = tpu.memref_slice %arg2[%80, %c0_i32_109] : memref<64x128xf32, #tpu.memory_space<any>> -> memref<1x128xf32, #tpu.memory_space<any>>
    %c11_i32_110 = arith.constant 11 : i32
    %c0_i32_111 = arith.constant 0 : i32
    %158 = tpu.memref_slice %arg3[%c11_i32_110, %c0_i32_111] : memref<16x128xf32, #tpu.memory_space<vmem>> -> memref<1x128xf32, #tpu.memory_space<vmem>>
    %159 = tpu.memref_slice %arg4[%c11_i32_108] : memref<16x!tpu.dma_semaphore, #tpu.memory_space<semaphore_mem>> -> memref<1x!tpu.dma_semaphore, #tpu.memory_space<semaphore_mem>>
    %160 = tpu.memref_squeeze %159 : memref<1x!tpu.dma_semaphore, #tpu.memory_space<semaphore_mem>> -> memref<!tpu.dma_semaphore, #tpu.memory_space<semaphore_mem>>
    tpu.wait_dma2 semaphore(%160 : memref<!tpu.dma_semaphore, #tpu.memory_space<semaphore_mem>>) src(%157 : memref<1x128xf32, #tpu.memory_space<any>>) dst(%158 : memref<1x128xf32, #tpu.memory_space<vmem>>)
    %c12_i32_112 = arith.constant 12 : i32
    %c0_i32_113 = arith.constant 0 : i32
    %161 = tpu.memref_slice %arg2[%87, %c0_i32_113] : memref<64x128xf32, #tpu.memory_space<any>> -> memref<1x128xf32, #tpu.memory_space<any>>
    %c12_i32_114 = arith.constant 12 : i32
    %c0_i32_115 = arith.constant 0 : i32
    %162 = tpu.memref_slice %arg3[%c12_i32_114, %c0_i32_115] : memref<16x128xf32, #tpu.memory_space<vmem>> -> memref<1x128xf32, #tpu.memory_space<vmem>>
    %163 = tpu.memref_slice %arg4[%c12_i32_112] : memref<16x!tpu.dma_semaphore, #tpu.memory_space<semaphore_mem>> -> memref<1x!tpu.dma_semaphore, #tpu.memory_space<semaphore_mem>>
    %164 = tpu.memref_squeeze %163 : memref<1x!tpu.dma_semaphore, #tpu.memory_space<semaphore_mem>> -> memref<!tpu.dma_semaphore, #tpu.memory_space<semaphore_mem>>
    tpu.wait_dma2 semaphore(%164 : memref<!tpu.dma_semaphore, #tpu.memory_space<semaphore_mem>>) src(%161 : memref<1x128xf32, #tpu.memory_space<any>>) dst(%162 : memref<1x128xf32, #tpu.memory_space<vmem>>)
    %c13_i32_116 = arith.constant 13 : i32
    %c0_i32_117 = arith.constant 0 : i32
    %165 = tpu.memref_slice %arg2[%94, %c0_i32_117] : memref<64x128xf32, #tpu.memory_space<any>> -> memref<1x128xf32, #tpu.memory_space<any>>
    %c13_i32_118 = arith.constant 13 : i32
    %c0_i32_119 = arith.constant 0 : i32
    %166 = tpu.memref_slice %arg3[%c13_i32_118, %c0_i32_119] : memref<16x128xf32, #tpu.memory_space<vmem>> -> memref<1x128xf32, #tpu.memory_space<vmem>>
    %167 = tpu.memref_slice %arg4[%c13_i32_116] : memref<16x!tpu.dma_semaphore, #tpu.memory_space<semaphore_mem>> -> memref<1x!tpu.dma_semaphore, #tpu.memory_space<semaphore_mem>>
    %168 = tpu.memref_squeeze %167 : memref<1x!tpu.dma_semaphore, #tpu.memory_space<semaphore_mem>> -> memref<!tpu.dma_semaphore, #tpu.memory_space<semaphore_mem>>
    tpu.wait_dma2 semaphore(%168 : memref<!tpu.dma_semaphore, #tpu.memory_space<semaphore_mem>>) src(%165 : memref<1x128xf32, #tpu.memory_space<any>>) dst(%166 : memref<1x128xf32, #tpu.memory_space<vmem>>)
    %c14_i32_120 = arith.constant 14 : i32
    %c0_i32_121 = arith.constant 0 : i32
    %169 = tpu.memref_slice %arg2[%101, %c0_i32_121] : memref<64x128xf32, #tpu.memory_space<any>> -> memref<1x128xf32, #tpu.memory_space<any>>
    %c14_i32_122 = arith.constant 14 : i32
    %c0_i32_123 = arith.constant 0 : i32
    %170 = tpu.memref_slice %arg3[%c14_i32_122, %c0_i32_123] : memref<16x128xf32, #tpu.memory_space<vmem>> -> memref<1x128xf32, #tpu.memory_space<vmem>>
    %171 = tpu.memref_slice %arg4[%c14_i32_120] : memref<16x!tpu.dma_semaphore, #tpu.memory_space<semaphore_mem>> -> memref<1x!tpu.dma_semaphore, #tpu.memory_space<semaphore_mem>>
    %172 = tpu.memref_squeeze %171 : memref<1x!tpu.dma_semaphore, #tpu.memory_space<semaphore_mem>> -> memref<!tpu.dma_semaphore, #tpu.memory_space<semaphore_mem>>
    tpu.wait_dma2 semaphore(%172 : memref<!tpu.dma_semaphore, #tpu.memory_space<semaphore_mem>>) src(%169 : memref<1x128xf32, #tpu.memory_space<any>>) dst(%170 : memref<1x128xf32, #tpu.memory_space<vmem>>)
    %c15_i32_124 = arith.constant 15 : i32
    %c0_i32_125 = arith.constant 0 : i32
    %173 = tpu.memref_slice %arg2[%108, %c0_i32_125] : memref<64x128xf32, #tpu.memory_space<any>> -> memref<1x128xf32, #tpu.memory_space<any>>
    %c15_i32_126 = arith.constant 15 : i32
    %c0_i32_127 = arith.constant 0 : i32
    %174 = tpu.memref_slice %arg3[%c15_i32_126, %c0_i32_127] : memref<16x128xf32, #tpu.memory_space<vmem>> -> memref<1x128xf32, #tpu.memory_space<vmem>>
    %175 = tpu.memref_slice %arg4[%c15_i32_124] : memref<16x!tpu.dma_semaphore, #tpu.memory_space<semaphore_mem>> -> memref<1x!tpu.dma_semaphore, #tpu.memory_space<semaphore_mem>>
    %176 = tpu.memref_squeeze %175 : memref<1x!tpu.dma_semaphore, #tpu.memory_space<semaphore_mem>> -> memref<!tpu.dma_semaphore, #tpu.memory_space<semaphore_mem>>
    tpu.wait_dma2 semaphore(%176 : memref<!tpu.dma_semaphore, #tpu.memory_space<semaphore_mem>>) src(%173 : memref<1x128xf32, #tpu.memory_space<any>>) dst(%174 : memref<1x128xf32, #tpu.memory_space<vmem>>)
    return
  }
  func.func @transform_1(%arg0: i32, %arg1: memref<32xi32, #tpu.memory_space<smem>>) -> (i32, i32) {
    %c0_i32 = arith.constant 0 : i32
    %c0_i32_0 = arith.constant 0 : i32
    return %arg0, %c0_i32 : i32, i32
  }
}

</mosaic_0001>

<bundles_post_ra>
// kernel: tpu_custom_call.1
= control target key start
LH: loop header
LB: loop body
LE: loop exit
PB: predicated region body
PF: predicated region fallthrough
CT: control target
= control target key end

     0   :  { %s1544_s0 = inlined_call_operand.hbm [shape: s32[32], index: 0, kind: input, shape index: {}]   ;;  %s1545_s1 = inlined_call_operand.hbm [shape: f32[64,128], index: 1, kind: input, shape index: {}]   ;;  %s1546_s2 = inlined_call_operand.hbm [shape: f32[32,128], index: 2, kind: output, shape index: {}]  }
   0x1   :  { %s636_s11 = scalar_lea.hbm %s1544_s0, 16 }
   0x2   :  { %p637_p0 = scmp.ne.s32.totalorder %s1544_s0, %s636_s11  ;;  %p640_p1 = scmp.lt.u32.totalorder %s636_s11, %s1544_s0 }
   0x4   :  { %p642_p2 = pnand %p640_p1, %p637_p0 }
   0x6   :  { %645 = shalt.err (!%p642_p2)  }
   0x7   :  { %s1120_s16 = smov [#allocation4]  }
   0x8   :  { %8 = dma.hbm_to_smem %s1544_s0, 16, %s1120_s16, [#allocation3] }
   0x9   :  { %1070 = dma.done.wait [#allocation3], 16 }
   0xa   :  { %1071 = vsyncadd [#allocation3], 4294967280 }
   0xb   :  { %10 = sfence }
   0xc   :  { %11 = vsyncpa [#allocation6], 0 }
   0xd   :  { %13 = vsyncpa [#allocation6 + $0x1], 0  ;;  %s1151_s19 = smov 0   ;;  %s1153_s20 = smov 0  }
   0xe   :  { %s1155_s21 = smov 0  }
   0xf LB: > { %s559_s0 = sadd.s32 4294967295, %s1118_s21   ;;  %s1168_s22 = sadd.s32 1, %s1118_s21   ;;  %s1118_s21 = sphi %s1155_s21, %s1557_s21   ;;  %s1114_s20 = sphi %s1153_s20, %s1556_s20   ;;  %s1110_s19 = sphi %s1151_s19, %s1555_s19  }
  0x10   : > { %s22_s23 = ssub.s32 %s1118_s21, %s1168_s22  ;;  %s25_s24 = sadd.s32 1, %s1114_s20 }
  0x11   : > { %p23_p3 = scmp.eq.s32.totalorder %s22_s23, 0  ;;  %p560_p4 = scmp.ne.s32.totalorder %s22_s23, 0 }
  0x12   : > { %p29_p5 = scmp.eq.s32.totalorder %s1118_s21, 1  ;;  %p34_p6 = scmp.ne.s32.totalorder %s1114_s20, %s1110_s19 }
  0x13   : > { %s1177_s25 = scalar_select %p23_p3, %s1114_s20, %s25_s24  }
  0x14   : > { %p1179_p7 = por %p560_p4, %p29_p5  ;;  %p35_p8 = scmp.eq.s32.totalorder %s559_s0, 1 }
  0x15   : > { %1549 = sst [smem:[#allocation59_spill]] %s1177_s25  ;;  %p561_p10 = scmp.ge.s32.totalorder %s1118_s21, 2 }
  0x16   : > { %p1183_p9 = por %p35_p8, %p34_p6  ;;  %s1548_s28 = sand.u32 (!%p561_p10), 1, %s1114_s20  }
  0x17   : > { %44 = sbr.rel (%p561_p10) target bundleno = 440 (0x1b8), region = 12  ;;  %s1190_s29 = sshll.u32 (!%p561_p10), %s1118_s21, 4 }
  0x18   : > { %s562_s30 = sshll.u32 (!%p561_p10), %s1548_s28, 4  ;;  %s54_s3 = sld [smem:[#allocation4 + %s1190_s29]] (!%p561_p10) }
  0x19   : > { %s68_s4 = sadd.s32 (!%p561_p10), 1, %s1190_s29  ;;  %s1196_s5 = scalar_lea.vmem (!%p561_p10), [#allocation5], %s562_s30 }
  0x1a   : > { %s64_s6 = sshll.u32 (!%p561_p10), %s1196_s5, 4  ;;  %s1199_s7 = sld [smem:[#allocation4 + %s68_s4]] (!%p561_p10)  ;;  %s1201_s6 = int_to_ptr.vmem [resolvable:$true] %s64_s6 }
  0x1b   : > { %s72_s8 = scalar_lea.vmem (!%p561_p10), %s1196_s5, 1 [#allocation5]  ;;  %s85_s10 = sadd.s32 (!%p561_p10), 2, %s1190_s29 }
  0x1c   : > { %s81_s9 = sshll.u32 (!%p561_p10), %s72_s8, 4  ;;  %s1207_s11 = sld [smem:[#allocation4 + %s85_s10]] (!%p561_p10)  ;;  %s1205_s9 = int_to_ptr.vmem [resolvable:$true] %s81_s9 }
  0x1d   : > { %s89_s13 = scalar_lea.vmem (!%p561_p10), %s1196_s5, 2 [#allocation5]  ;;  %s1216_s24 = scalar_lea.hbm (!%p561_p10), %s1545_s1, 1024 }
  0x1e   : > { %s564_s12 = sshll.u32 %s54_s3, 4  ;;  %s98_s17 = sshll.u32 %s89_s13, 4  ;;  %s1237_s17 = int_to_ptr.vmem [resolvable:$true] %s98_s17 }
  0x1f   : > { %s56_s16 = scalar_lea.hbm %s1545_s1, %s564_s12 }
  0x20   : > { %s646_s18 = scalar_lea.hbm %s56_s16, 16  ;;  %p649_p12 = scmp.lt.u32.totalorder %s56_s16, %s1545_s1 }
  0x21   : > { %p647_p11 = scmp.ne.s32.totalorder %s56_s16, %s646_s18  ;;  %p650_p13 = scmp.lt.u32.totalorder %s1216_s24, %s646_s18 }
  0x22   : > { %p652_p1 = scmp.lt.u32.totalorder %s646_s18, %s56_s16 }
  0x23   : > { %p651_p0 = por %p650_p13, %p649_p12 }
  0x25   : > { %p653_p2 = por %p652_p1, %p651_p0 }
  0x27   : > { %p654_p3 = pnand %p653_p2, %p647_p11 }
  0x29   : > { %657 = shalt.err (!%p654_p3)  }
  0x2a   : > { %s658_s3 = scalar_lea.vmem %s1201_s6, 16  ;;  %s1121_s8 = smov [#allocation5]  }
  0x2b   : > { %p659_p4 = scmp.ne.s32.totalorder %s1201_s6, %s658_s3  ;;  %s660_s10 = sshll.u32 %s1121_s8, 4  ;;  %s1224_s10 = int_to_ptr.vmem [resolvable:$false] %s660_s10 }
  0x2c   : > { %s1227_s12 = scalar_lea.vmem %s1224_s10, 512  ;;  %p1547_p5 = scmp.lt.s32.totalorder %s1201_s6, %s1224_s10 }
  0x2d   : > { %p664_p6 = scmp.lt.s32.totalorder %s1227_s12, %s658_s3 }
  0x2f   : > { %p665_p8 = por %p664_p6, %p1547_p5 }
  0x31   : > { %p666_p10 = pnand %p665_p8, %p659_p4 }
  0x33   : > { %669 = shalt.err (!%p666_p10)  }
  0x34   : > { %67 = dma.hbm_to_vmem [thread:$0]  %s56_s16, 16, %s1201_s6, [#allocation2] }
  0x35   : > { %s565_s13 = sshll.u32 %s1199_s7, 4  ;;  %s102_s0 = sadd.s32 3, %s1190_s29 }
  0x36   : > { %s71_s18 = scalar_lea.hbm %s1545_s1, %s565_s13 }
  0x37   : > { %s670_s23 = scalar_lea.hbm %s71_s18, 16  ;;  %p673_p12 = scmp.lt.u32.totalorder %s71_s18, %s1545_s1 }
  0x38   : > { %p671_p11 = scmp.ne.s32.totalorder %s71_s18, %s670_s23  ;;  %p674_p13 = scmp.lt.u32.totalorder %s1216_s24, %s670_s23 }
  0x39   : > { %p676_p1 = scmp.lt.u32.totalorder %s670_s23, %s71_s18 }
  0x3a   : > { %p675_p0 = por %p674_p13, %p673_p12 }
  0x3c   : > { %p677_p2 = por %p676_p1, %p675_p0 }
  0x3e   : > { %p678_p3 = pnand %p677_p2, %p671_p11 }
  0x40   : > { %681 = shalt.err (!%p678_p3)  }
  0x41   : > { %s682_s7 = scalar_lea.vmem %s1205_s9, 16  ;;  %p687_p6 = scmp.lt.s32.totalorder %s1205_s9, %s1224_s10 }
  0x42   : > { %p683_p4 = scmp.ne.s32.totalorder %s1205_s9, %s682_s7  ;;  %p688_p8 = scmp.lt.s32.totalorder %s1227_s12, %s682_s7 }
  0x44   : > { %p689_p10 = por %p688_p8, %p687_p6 }
  0x46   : > { %p690_p5 = pnand %p689_p10, %p683_p4 }
  0x48   : > { %693 = shalt.err (!%p690_p5)  }
  0x49   : > { %84 = dma.hbm_to_vmem [thread:$0]  %s71_s18, 16, %s1205_s9, [#allocation2 + $0x1] }
  0x4a   : > { %s566_s16 = sshll.u32 %s1207_s11, 4  ;;  %s1254_s3 = sld [smem:[#allocation4 + %s102_s0]] }
  0x4b   : > { %s88_s14 = scalar_lea.hbm %s1545_s1, %s566_s16  ;;  %s106_s15 = scalar_lea.vmem %s1196_s5, 3 [#allocation5] }
  0x4c   : > { %s694_s23 = scalar_lea.hbm %s88_s14, 16  ;;  %p697_p12 = scmp.lt.u32.totalorder %s88_s14, %s1545_s1 }
  0x4d   : > { %p695_p11 = scmp.ne.s32.totalorder %s88_s14, %s694_s23  ;;  %p698_p5 = scmp.lt.u32.totalorder %s1216_s24, %s694_s23 }
  0x4e   : > { %p700_p0 = scmp.lt.u32.totalorder %s694_s23, %s88_s14 }
  0x4f   : > { %p699_p13 = por %p698_p5, %p697_p12 }
  0x51   : > { %p701_p1 = por %p700_p0, %p699_p13 }
  0x53   : > { %p702_p2 = pnand %p701_p1, %p695_p11 }
  0x55   : > { %705 = shalt.err (!%p702_p2)  }
  0x56   : > { %s706_s9 = scalar_lea.vmem %s1237_s17, 16  ;;  %p711_p4 = scmp.lt.s32.totalorder %s1237_s17, %s1224_s10 }
  0x57   : > { %p707_p3 = scmp.ne.s32.totalorder %s1237_s17, %s706_s9  ;;  %p712_p6 = scmp.lt.s32.totalorder %s1227_s12, %s706_s9 }
  0x59   : > { %p713_p8 = por %p712_p6, %p711_p4 }
  0x5b   : > { %p714_p10 = pnand %p713_p8, %p707_p3 }
  0x5d   : > { %717 = shalt.err (!%p714_p10)  }
  0x5e   : > { %101 = dma.hbm_to_vmem [thread:$0]  %s88_s14, 16, %s1237_s17, [#allocation2 + $0x2] }
  0x5f   : > { %s115_s11 = sshll.u32 %s106_s15, 4  ;;  %s119_s18 = sadd.s32 4, %s1190_s29  ;;  %s116_s11 = int_to_ptr.vmem [resolvable:$true] %s115_s11 }
  0x60   : > { %s1271_s0 = sld [smem:[#allocation4 + %s119_s18]]  ;;  %s123_s7 = scalar_lea.vmem %s1196_s5, 4 [#allocation5] }
  0x61   : > { %s136_s16 = sadd.s32 5, %s1190_s29  ;;  %s567_s8 = sshll.u32 %s1254_s3, 4 }
  0x62   : > { %s132_s13 = sshll.u32 %s123_s7, 4  ;;  %s105_s4 = scalar_lea.hbm %s1545_s1, %s567_s8  ;;  %s1279_s13 = int_to_ptr.vmem [resolvable:$true] %s132_s13 }
  0x63   : > { %s718_s9 = scalar_lea.hbm %s105_s4, 16  ;;  %p721_p12 = scmp.lt.u32.totalorder %s105_s4, %s1545_s1 }
  0x64   : > { %p719_p11 = scmp.ne.s32.totalorder %s105_s4, %s718_s9  ;;  %p722_p5 = scmp.lt.u32.totalorder %s1216_s24, %s718_s9 }
  0x65   : > { %p724_p0 = scmp.lt.u32.totalorder %s718_s9, %s105_s4 }
  0x66   : > { %p723_p13 = por %p722_p5, %p721_p12 }
  0x68   : > { %p725_p1 = por %p724_p0, %p723_p13 }
  0x6a   : > { %p726_p2 = pnand %p725_p1, %p719_p11 }
  0x6c   : > { %729 = shalt.err (!%p726_p2)  }
  0x6d   : > { %s730_s17 = scalar_lea.vmem %s116_s11, 16  ;;  %p735_p4 = scmp.lt.s32.totalorder %s116_s11, %s1224_s10 }
  0x6e   : > { %p731_p3 = scmp.ne.s32.totalorder %s116_s11, %s730_s17  ;;  %p736_p6 = scmp.lt.s32.totalorder %s1227_s12, %s730_s17 }
  0x70   : > { %p737_p8 = por %p736_p6, %p735_p4 }
  0x72   : > { %p738_p10 = pnand %p737_p8, %p731_p3 }
  0x74   : > { %741 = shalt.err (!%p738_p10)  }
  0x75   : > { %118 = dma.hbm_to_vmem [thread:$0]  %s105_s4, 16, %s116_s11, [#allocation2 + $0x3] }
  0x76   : > { %s1287_s25 = sld [smem:[#allocation4 + %s136_s16]]  ;;  %s140_s28 = scalar_lea.vmem %s1196_s5, 5 [#allocation5] }
  0x77   : > { %s568_s3 = sshll.u32 %s1271_s0, 4  ;;  %s149_s14 = sshll.u32 %s140_s28, 4  ;;  %s1294_s14 = int_to_ptr.vmem [resolvable:$true] %s149_s14 }
  0x78   : > { %s122_s7 = scalar_lea.hbm %s1545_s1, %s568_s3 }
  0x79   : > { %s742_s8 = scalar_lea.hbm %s122_s7, 16  ;;  %p745_p12 = scmp.lt.u32.totalorder %s122_s7, %s1545_s1 }
  0x7a   : > { %p743_p11 = scmp.ne.s32.totalorder %s122_s7, %s742_s8  ;;  %p746_p5 = scmp.lt.u32.totalorder %s1216_s24, %s742_s8 }
  0x7b   : > { %p748_p0 = scmp.lt.u32.totalorder %s742_s8, %s122_s7 }
  0x7c   : > { %p747_p13 = por %p746_p5, %p745_p12 }
  0x7e   : > { %p749_p1 = por %p748_p0, %p747_p13 }
  0x80   : > { %p750_p2 = pnand %p749_p1, %p743_p11 }
  0x82   : > { %753 = shalt.err (!%p750_p2)  }
  0x83   : > { %s754_s11 = scalar_lea.vmem %s1279_s13, 16  ;;  %p759_p4 = scmp.lt.s32.totalorder %s1279_s13, %s1224_s10 }
  0x84   : > { %p755_p3 = scmp.ne.s32.totalorder %s1279_s13, %s754_s11  ;;  %p760_p6 = scmp.lt.s32.totalorder %s1227_s12, %s754_s11 }
  0x86   : > { %p761_p8 = por %p760_p6, %p759_p4 }
  0x88   : > { %p762_p10 = pnand %p761_p8, %p755_p3 }
  0x8a   : > { %765 = shalt.err (!%p762_p10)  }
  0x8b   : > { %135 = dma.hbm_to_vmem [thread:$0]  %s122_s7, 16, %s1279_s13, [#allocation2 + $0x4] }
  0x8c   : > { %s153_s0 = sadd.s32 6, %s1190_s29  ;;  %s157_s16 = scalar_lea.vmem %s1196_s5, 6 [#allocation5] }
  0x8d   : > { %s1308_s4 = sld [smem:[#allocation4 + %s153_s0]]  ;;  %s166_s9 = sshll.u32 %s157_s16, 4  ;;  %s1311_s9 = int_to_ptr.vmem [resolvable:$true] %s166_s9 }
  0x8e   : > { %s569_s17 = sshll.u32 %s1287_s25, 4  ;;  %s170_s18 = sadd.s32 7, %s1190_s29 }
  0x8f   : > { %s139_s15 = scalar_lea.hbm %s1545_s1, %s569_s17 }
  0x90   : > { %s766_s8 = scalar_lea.hbm %s139_s15, 16  ;;  %p769_p12 = scmp.lt.u32.totalorder %s139_s15, %s1545_s1 }
  0x91   : > { %p767_p11 = scmp.ne.s32.totalorder %s139_s15, %s766_s8  ;;  %p770_p5 = scmp.lt.u32.totalorder %s1216_s24, %s766_s8 }
  0x92   : > { %p772_p0 = scmp.lt.u32.totalorder %s766_s8, %s139_s15 }
  0x93   : > { %p771_p13 = por %p770_p5, %p769_p12 }
  0x95   : > { %p773_p1 = por %p772_p0, %p771_p13 }
  0x97   : > { %p774_p2 = pnand %p773_p1, %p767_p11 }
  0x99   : > { %777 = shalt.err (!%p774_p2)  }
  0x9a   : > { %s778_s13 = scalar_lea.vmem %s1294_s14, 16  ;;  %p783_p4 = scmp.lt.s32.totalorder %s1294_s14, %s1224_s10 }
  0x9b   : > { %p779_p3 = scmp.ne.s32.totalorder %s1294_s14, %s778_s13  ;;  %p784_p6 = scmp.lt.s32.totalorder %s1227_s12, %s778_s13 }
  0x9d   : > { %p785_p8 = por %p784_p6, %p783_p4 }
  0x9f   : > { %p786_p10 = pnand %p785_p8, %p779_p3 }
  0xa1   : > { %789 = shalt.err (!%p786_p10)  }
  0xa2   : > { %152 = dma.hbm_to_vmem [thread:$0]  %s139_s15, 16, %s1294_s14, [#allocation2 + $0x5] }
  0xa3   : > { %s1327_s25 = sld [smem:[#allocation4 + %s170_s18]]  ;;  %s174_s7 = scalar_lea.vmem %s1196_s5, 7 [#allocation5] }
  0xa4   : > { %s183_s11 = sshll.u32 %s174_s7, 4  ;;  %s187_s0 = sadd.s32 8, %s1190_s29  ;;  %s1332_s11 = int_to_ptr.vmem [resolvable:$true] %s183_s11 }
  0xa5   : > { %s570_s16 = sshll.u32 %s1308_s4, 4  ;;  %s1337_s8 = sld [smem:[#allocation4 + %s187_s0]] }
  0xa6   : > { %s156_s3 = scalar_lea.hbm %s1545_s1, %s570_s16 }
  0xa7   : > { %s790_s23 = scalar_lea.hbm %s156_s3, 16  ;;  %p793_p12 = scmp.lt.u32.totalorder %s156_s3, %s1545_s1 }
  0xa8   : > { %p791_p11 = scmp.ne.s32.totalorder %s156_s3, %s790_s23  ;;  %p794_p5 = scmp.lt.u32.totalorder %s1216_s24, %s790_s23 }
  0xa9   : > { %p796_p0 = scmp.lt.u32.totalorder %s790_s23, %s156_s3 }
  0xaa   : > { %p795_p13 = por %p794_p5, %p793_p12 }
  0xac   : > { %p797_p1 = por %p796_p0, %p795_p13 }
  0xae   : > { %p798_p2 = pnand %p797_p1, %p791_p11 }
  0xb0   : > { %801 = shalt.err (!%p798_p2)  }
  0xb1   : > { %s802_s14 = scalar_lea.vmem %s1311_s9, 16  ;;  %p807_p4 = scmp.lt.s32.totalorder %s1311_s9, %s1224_s10 }
  0xb2   : > { %p803_p3 = scmp.ne.s32.totalorder %s1311_s9, %s802_s14  ;;  %p808_p6 = scmp.lt.s32.totalorder %s1227_s12, %s802_s14 }
  0xb4   : > { %p809_p8 = por %p808_p6, %p807_p4 }
  0xb6   : > { %p810_p10 = pnand %p809_p8, %p803_p3 }
  0xb8   : > { %813 = shalt.err (!%p810_p10)  }
  0xb9   : > { %169 = dma.hbm_to_vmem [thread:$0]  %s156_s3, 16, %s1311_s9, [#allocation2 + $0x6] }
  0xba   : > { %s191_s4 = scalar_lea.vmem %s1196_s5, 8 [#allocation5]  ;;  %s204_s15 = sadd.s32 9, %s1190_s29 }
  0xbb   : > { %s571_s18 = sshll.u32 %s1327_s25, 4  ;;  %s200_s7 = sshll.u32 %s191_s4, 4  ;;  %s1355_s7 = int_to_ptr.vmem [resolvable:$true] %s200_s7 }
  0xbc   : > { %s173_s17 = scalar_lea.hbm %s1545_s1, %s571_s18 }
  0xbd   : > { %s814_s28 = scalar_lea.hbm %s173_s17, 16  ;;  %p817_p12 = scmp.lt.u32.totalorder %s173_s17, %s1545_s1 }
  0xbe   : > { %p815_p11 = scmp.ne.s32.totalorder %s173_s17, %s814_s28  ;;  %p818_p5 = scmp.lt.u32.totalorder %s1216_s24, %s814_s28 }
  0xbf   : > { %p820_p0 = scmp.lt.u32.totalorder %s814_s28, %s173_s17 }
  0xc0   : > { %p819_p13 = por %p818_p5, %p817_p12 }
  0xc2   : > { %p821_p1 = por %p820_p0, %p819_p13 }
  0xc4   : > { %p822_p2 = pnand %p821_p1, %p815_p11 }
  0xc6   : > { %825 = shalt.err (!%p822_p2)  }
  0xc7   : > { %s826_s9 = scalar_lea.vmem %s1332_s11, 16  ;;  %p831_p4 = scmp.lt.s32.totalorder %s1332_s11, %s1224_s10 }
  0xc8   : > { %p827_p3 = scmp.ne.s32.totalorder %s1332_s11, %s826_s9  ;;  %p832_p6 = scmp.lt.s32.totalorder %s1227_s12, %s826_s9 }
  0xca   : > { %p833_p8 = por %p832_p6, %p831_p4 }
  0xcc   : > { %p834_p10 = pnand %p833_p8, %p827_p3 }
  0xce   : > { %837 = shalt.err (!%p834_p10)  }
  0xcf   : > { %186 = dma.hbm_to_vmem [thread:$0]  %s173_s17, 16, %s1332_s11, [#allocation2 + $0x7] }
  0xd0   : > { %s572_s25 = sshll.u32 %s1337_s8, 4  ;;  %s1368_s3 = sld [smem:[#allocation4 + %s204_s15]] }
  0xd1   : > { %s190_s4 = scalar_lea.hbm %s1545_s1, %s572_s25  ;;  %s208_s18 = scalar_lea.vmem %s1196_s5, 9 [#allocation5] }
  0xd2   : > { %s838_s0 = scalar_lea.hbm %s190_s4, 16  ;;  %p841_p12 = scmp.lt.u32.totalorder %s190_s4, %s1545_s1 }
  0xd3   : > { %p839_p11 = scmp.ne.s32.totalorder %s190_s4, %s838_s0  ;;  %p842_p5 = scmp.lt.u32.totalorder %s1216_s24, %s838_s0 }
  0xd4   : > { %p844_p0 = scmp.lt.u32.totalorder %s838_s0, %s190_s4 }
  0xd5   : > { %p843_p13 = por %p842_p5, %p841_p12 }
  0xd7   : > { %p845_p1 = por %p844_p0, %p843_p13 }
  0xd9   : > { %p846_p2 = pnand %p845_p1, %p839_p11 }
  0xdb   : > { %849 = shalt.err (!%p846_p2)  }
  0xdc   : > { %s850_s11 = scalar_lea.vmem %s1355_s7, 16  ;;  %p855_p4 = scmp.lt.s32.totalorder %s1355_s7, %s1224_s10 }
  0xdd   : > { %p851_p3 = scmp.ne.s32.totalorder %s1355_s7, %s850_s11  ;;  %p856_p6 = scmp.lt.s32.totalorder %s1227_s12, %s850_s11 }
  0xdf   : > { %p857_p8 = por %p856_p6, %p855_p4 }
  0xe1   : > { %p858_p10 = pnand %p857_p8, %p851_p3 }
  0xe3   : > { %861 = shalt.err (!%p858_p10)  }
  0xe4   : > { %203 = dma.hbm_to_vmem [thread:$0]  %s190_s4, 16, %s1355_s7, [#allocation2 + $0x8] }
  0xe5   : > { %s217_s8 = sshll.u32 %s208_s18, 4  ;;  %s221_s15 = sadd.s32 10, %s1190_s29  ;;  %s218_s8 = int_to_ptr.vmem [resolvable:$true] %s217_s8 }
  0xe6   : > { %s1385_s17 = sld [smem:[#allocation4 + %s221_s15]]  ;;  %s225_s23 = scalar_lea.vmem %s1196_s5, 10 [#allocation5] }
  0xe7   : > { %s238_s30 = sadd.s32 11, %s1190_s29  ;;  %s573_s9 = sshll.u32 %s1368_s3, 4 }
  0xe8   : > { %s234_s25 = sshll.u32 %s225_s23, 4  ;;  %s207_s0 = scalar_lea.hbm %s1545_s1, %s573_s9  ;;  %s1393_s25 = int_to_ptr.vmem [resolvable:$true] %s234_s25 }
  0xe9   : > { %s862_s16 = scalar_lea.hbm %s207_s0, 16  ;;  %p865_p12 = scmp.lt.u32.totalorder %s207_s0, %s1545_s1 }
  0xea   : > { %p863_p11 = scmp.ne.s32.totalorder %s207_s0, %s862_s16  ;;  %p866_p5 = scmp.lt.u32.totalorder %s1216_s24, %s862_s16 }
  0xeb   : > { %p868_p0 = scmp.lt.u32.totalorder %s862_s16, %s207_s0 }
  0xec   : > { %p867_p13 = por %p866_p5, %p865_p12 }
  0xee   : > { %p869_p1 = por %p868_p0, %p867_p13 }
  0xf0   : > { %p870_p2 = pnand %p869_p1, %p863_p11 }
  0xf2   : > { %873 = shalt.err (!%p870_p2)  }
  0xf3   : > { %s874_s7 = scalar_lea.vmem %s218_s8, 16  ;;  %p879_p4 = scmp.lt.s32.totalorder %s218_s8, %s1224_s10 }
  0xf4   : > { %p875_p3 = scmp.ne.s32.totalorder %s218_s8, %s874_s7  ;;  %p880_p6 = scmp.lt.s32.totalorder %s1227_s12, %s874_s7 }
  0xf6   : > { %p881_p8 = por %p880_p6, %p879_p4 }
  0xf8   : > { %p882_p10 = pnand %p881_p8, %p875_p3 }
  0xfa   : > { %885 = shalt.err (!%p882_p10)  }
  0xfb   : > { %220 = dma.hbm_to_vmem [thread:$0]  %s207_s0, 16, %s218_s8, [#allocation2 + $0x9] }
  0xfc   : > { %s1401_s3 = sld [smem:[#allocation4 + %s238_s30]]  ;;  %s242_s4 = scalar_lea.vmem %s1196_s5, 11 [#allocation5] }
  0xfd   : > { %s574_s18 = sshll.u32 %s1385_s17, 4  ;;  %s251_s15 = sshll.u32 %s242_s4, 4  ;;  %s1408_s15 = int_to_ptr.vmem [resolvable:$true] %s251_s15 }
  0xfe   : > { %s224_s13 = scalar_lea.hbm %s1545_s1, %s574_s18 }
  0xff   : > { %s886_s14 = scalar_lea.hbm %s224_s13, 16  ;;  %p889_p12 = scmp.lt.u32.totalorder %s224_s13, %s1545_s1 }
 0x100   : > { %p887_p11 = scmp.ne.s32.totalorder %s224_s13, %s886_s14  ;;  %p890_p5 = scmp.lt.u32.totalorder %s1216_s24, %s886_s14 }
 0x101   : > { %p892_p0 = scmp.lt.u32.totalorder %s886_s14, %s224_s13 }
 0x102   : > { %p891_p13 = por %p890_p5, %p889_p12 }
 0x104   : > { %p893_p1 = por %p892_p0, %p891_p13 }
 0x106   : > { %p894_p2 = pnand %p893_p1, %p887_p11 }
 0x108   : > { %897 = shalt.err (!%p894_p2)  }
 0x109   : > { %s898_s8 = scalar_lea.vmem %s1393_s25, 16  ;;  %p903_p4 = scmp.lt.s32.totalorder %s1393_s25, %s1224_s10 }
 0x10a   : > { %p899_p3 = scmp.ne.s32.totalorder %s1393_s25, %s898_s8  ;;  %p904_p6 = scmp.lt.s32.totalorder %s1227_s12, %s898_s8 }
 0x10c   : > { %p905_p8 = por %p904_p6, %p903_p4 }
 0x10e   : > { %p906_p10 = pnand %p905_p8, %p899_p3 }
 0x110   : > { %909 = shalt.err (!%p906_p10)  }
 0x111   : > { %237 = dma.hbm_to_vmem [thread:$0]  %s224_s13, 16, %s1393_s25, [#allocation2 + $0xa] }
 0x112   : > { %s255_s17 = sadd.s32 12, %s1190_s29  ;;  %s259_s30 = scalar_lea.vmem %s1196_s5, 12 [#allocation5] }
 0x113   : > { %s1422_s0 = sld [smem:[#allocation4 + %s255_s17]]  ;;  %s268_s11 = sshll.u32 %s259_s30, 4  ;;  %s1425_s11 = int_to_ptr.vmem [resolvable:$true] %s268_s11 }
 0x114   : > { %s575_s7 = sshll.u32 %s1401_s3, 4  ;;  %s272_s9 = sadd.s32 13, %s1190_s29 }
 0x115   : > { %s241_s23 = scalar_lea.hbm %s1545_s1, %s575_s7 }
 0x116   : > { %s910_s14 = scalar_lea.hbm %s241_s23, 16  ;;  %p913_p12 = scmp.lt.u32.totalorder %s241_s23, %s1545_s1 }
 0x117   : > { %p911_p11 = scmp.ne.s32.totalorder %s241_s23, %s910_s14  ;;  %p914_p5 = scmp.lt.u32.totalorder %s1216_s24, %s910_s14 }
 0x118   : > { %p916_p0 = scmp.lt.u32.totalorder %s910_s14, %s241_s23 }
 0x119   : > { %p915_p13 = por %p914_p5, %p913_p12 }
 0x11b   : > { %p917_p1 = por %p916_p0, %p915_p13 }
 0x11d   : > { %p918_p2 = pnand %p917_p1, %p911_p11 }
 0x11f   : > { %921 = shalt.err (!%p918_p2)  }
 0x120   : > { %s922_s25 = scalar_lea.vmem %s1408_s15, 16  ;;  %p927_p4 = scmp.lt.s32.totalorder %s1408_s15, %s1224_s10 }
 0x121   : > { %p923_p3 = scmp.ne.s32.totalorder %s1408_s15, %s922_s25  ;;  %p928_p6 = scmp.lt.s32.totalorder %s1227_s12, %s922_s25 }
 0x123   : > { %p929_p8 = por %p928_p6, %p927_p4 }
 0x125   : > { %p930_p10 = pnand %p929_p8, %p923_p3 }
 0x127   : > { %933 = shalt.err (!%p930_p10)  }
 0x128   : > { %254 = dma.hbm_to_vmem [thread:$0]  %s241_s23, 16, %s1408_s15, [#allocation2 + $0xb] }
 0x129   : > { %s1441_s3 = sld [smem:[#allocation4 + %s272_s9]]  ;;  %s276_s13 = scalar_lea.vmem %s1196_s5, 13 [#allocation5] }
 0x12a   : > { %s285_s8 = sshll.u32 %s276_s13, 4  ;;  %s289_s17 = sadd.s32 14, %s1190_s29  ;;  %s1446_s8 = int_to_ptr.vmem [resolvable:$true] %s285_s8 }
 0x12b   : > { %s576_s30 = sshll.u32 %s1422_s0, 4  ;;  %s1451_s14 = sld [smem:[#allocation4 + %s289_s17]] }
 0x12c   : > { %s258_s18 = scalar_lea.hbm %s1545_s1, %s576_s30 }
 0x12d   : > { %s934_s16 = scalar_lea.hbm %s258_s18, 16  ;;  %p937_p12 = scmp.lt.u32.totalorder %s258_s18, %s1545_s1 }
 0x12e   : > { %p935_p11 = scmp.ne.s32.totalorder %s258_s18, %s934_s16  ;;  %p938_p5 = scmp.lt.u32.totalorder %s1216_s24, %s934_s16 }
 0x12f   : > { %p940_p0 = scmp.lt.u32.totalorder %s934_s16, %s258_s18 }
 0x130   : > { %p939_p13 = por %p938_p5, %p937_p12 }
 0x132   : > { %p941_p1 = por %p940_p0, %p939_p13 }
 0x134   : > { %p942_p2 = pnand %p941_p1, %p935_p11 }
 0x136   : > { %945 = shalt.err (!%p942_p2)  }
 0x137   : > { %s946_s15 = scalar_lea.vmem %s1425_s11, 16  ;;  %p951_p4 = scmp.lt.s32.totalorder %s1425_s11, %s1224_s10 }
 0x138   : > { %p947_p3 = scmp.ne.s32.totalorder %s1425_s11, %s946_s15  ;;  %p952_p6 = scmp.lt.s32.totalorder %s1227_s12, %s946_s15 }
 0x13a   : > { %p953_p8 = por %p952_p6, %p951_p4 }
 0x13c   : > { %p954_p10 = pnand %p953_p8, %p947_p3 }
 0x13e   : > { %957 = shalt.err (!%p954_p10)  }
 0x13f   : > { %271 = dma.hbm_to_vmem [thread:$0]  %s258_s18, 16, %s1425_s11, [#allocation2 + $0xc] }
 0x140   : > { %s293_s0 = scalar_lea.vmem %s1196_s5, 14 [#allocation5]  ;;  %s306_s23 = sadd.s32 15, %s1190_s29 }
 0x141   : > { %s577_s9 = sshll.u32 %s1441_s3, 4  ;;  %s302_s13 = sshll.u32 %s293_s0, 4  ;;  %s1469_s13 = int_to_ptr.vmem [resolvable:$true] %s302_s13 }
 0x142   : > { %s275_s7 = scalar_lea.hbm %s1545_s1, %s577_s9 }
 0x143   : > { %s958_s4 = scalar_lea.hbm %s275_s7, 16  ;;  %p961_p12 = scmp.lt.u32.totalorder %s275_s7, %s1545_s1 }
 0x144   : > { %p959_p11 = scmp.ne.s32.totalorder %s275_s7, %s958_s4  ;;  %p962_p5 = scmp.lt.u32.totalorder %s1216_s24, %s958_s4 }
 0x145   : > { %p964_p0 = scmp.lt.u32.totalorder %s958_s4, %s275_s7 }
 0x146   : > { %p963_p13 = por %p962_p5, %p961_p12 }
 0x148   : > { %p965_p1 = por %p964_p0, %p963_p13 }
 0x14a   : > { %p966_p2 = pnand %p965_p1, %p959_p11 }
 0x14c   : > { %969 = shalt.err (!%p966_p2)  }
 0x14d   : > { %s970_s29 = scalar_lea.vmem %s1446_s8, 16  ;;  %p975_p4 = scmp.lt.s32.totalorder %s1446_s8, %s1224_s10 }
 0x14e   : > { %p971_p3 = scmp.ne.s32.totalorder %s1446_s8, %s970_s29  ;;  %p976_p6 = scmp.lt.s32.totalorder %s1227_s12, %s970_s29 }
 0x150   : > { %p977_p8 = por %p976_p6, %p975_p4 }
 0x152   : > { %p978_p10 = pnand %p977_p8, %p971_p3 }
 0x154   : > { %981 = shalt.err (!%p978_p10)  }
 0x155   : > { %288 = dma.hbm_to_vmem [thread:$0]  %s275_s7, 16, %s1446_s8, [#allocation2 + $0xd] }
 0x156   : > { %s578_s11 = sshll.u32 %s1451_s14, 4  ;;  %s307_s3 = sld [smem:[#allocation4 + %s306_s23]] }
 0x157   : > { %s292_s15 = scalar_lea.hbm %s1545_s1, %s578_s11  ;;  %s310_s0 = scalar_lea.vmem %s1196_s5, 15 [#allocation5] }
 0x158   : > { %s982_s9 = scalar_lea.hbm %s292_s15, 16  ;;  %p985_p12 = scmp.lt.u32.totalorder %s292_s15, %s1545_s1 }
 0x159   : > { %p983_p11 = scmp.ne.s32.totalorder %s292_s15, %s982_s9  ;;  %p986_p5 = scmp.lt.u32.totalorder %s1216_s24, %s982_s9 }
 0x15a   : > { %p988_p0 = scmp.lt.u32.totalorder %s982_s9, %s292_s15 }
 0x15b   : > { %p987_p13 = por %p986_p5, %p985_p12 }
 0x15d   : > { %p989_p1 = por %p988_p0, %p987_p13 }
 0x15f   : > { %p990_p2 = pnand %p989_p1, %p983_p11 }
 0x161   : > { %993 = shalt.err (!%p990_p2)  }
 0x162   : > { %s994_s8 = scalar_lea.vmem %s1469_s13, 16  ;;  %p999_p4 = scmp.lt.s32.totalorder %s1469_s13, %s1224_s10 }
 0x163   : > { %p995_p3 = scmp.ne.s32.totalorder %s1469_s13, %s994_s8  ;;  %p1000_p6 = scmp.lt.s32.totalorder %s1227_s12, %s994_s8 }
 0x165   : > { %p1001_p8 = por %p1000_p6, %p999_p4 }
 0x167   : > { %p1002_p10 = pnand %p1001_p8, %p995_p3 }
 0x169   : > { %1005 = shalt.err (!%p1002_p10)  }
 0x16a   : > { %305 = dma.hbm_to_vmem [thread:$0]  %s292_s15, 16, %s1469_s13, [#allocation2 + $0xe] }
 0x16b   : > { %s319_s5 = sshll.u32 %s310_s0, 4  ;;  %s579_s14 = sshll.u32 %s307_s3, 4  ;;  %s320_s5 = int_to_ptr.vmem [resolvable:$true] %s319_s5 }
 0x16c   : > { %s309_s4 = scalar_lea.hbm %s1545_s1, %s579_s14 }
 0x16d   : > { %s1006_s16 = scalar_lea.hbm %s309_s4, 16  ;;  %p1009_p12 = scmp.lt.u32.totalorder %s309_s4, %s1545_s1 }
 0x16e   : > { %p1007_p11 = scmp.ne.s32.totalorder %s309_s4, %s1006_s16  ;;  %p1010_p5 = scmp.lt.u32.totalorder %s1216_s24, %s1006_s16 }
 0x16f   : > { %p1012_p0 = scmp.lt.u32.totalorder %s1006_s16, %s309_s4 }
 0x170   : > { %p1011_p13 = por %p1010_p5, %p1009_p12 }
 0x172   : > { %p1013_p1 = por %p1012_p0, %p1011_p13 }
 0x174   : > { %p1014_p2 = pnand %p1013_p1, %p1007_p11 }
 0x176   : > { %1017 = shalt.err (!%p1014_p2)  }
 0x177   : > { %s1018_s13 = scalar_lea.vmem %s320_s5, 16  ;;  %p1023_p4 = scmp.lt.s32.totalorder %s320_s5, %s1224_s10 }
 0x178   : > { %p1019_p3 = scmp.ne.s32.totalorder %s320_s5, %s1018_s13  ;;  %p1024_p6 = scmp.lt.s32.totalorder %s1227_s12, %s1018_s13 }
 0x17a   : > { %p1025_p8 = por %p1024_p6, %p1023_p4 }
 0x17c   : > { %p1026_p10 = pnand %p1025_p8, %p1019_p3 }
 0x17e   : > { %1029 = shalt.err (!%p1026_p10)  }
 0x17f   : > { %322 = dma.hbm_to_vmem [thread:$0]  %s309_s4, 16, %s320_s5, [#allocation2 + $0xf] }
 0x180   : > { %1072 = dma.done.wait [#allocation2], 16 }
 0x181   : > { %1073 = vsyncadd [#allocation2], 4294967280 }
 0x182   : > { %1074 = dma.done.wait [#allocation2 + $0x1], 16 }
 0x183   : > { %1075 = vsyncadd [#allocation2 + $0x1], 4294967280 }
 0x184   : > { %1076 = dma.done.wait [#allocation2 + $0x2], 16 }
 0x185   : > { %1077 = vsyncadd [#allocation2 + $0x2], 4294967280 }
 0x186   : > { %1078 = dma.done.wait [#allocation2 + $0x3], 16 }
 0x187   : > { %1079 = vsyncadd [#allocation2 + $0x3], 4294967280 }
 0x188   : > { %1080 = dma.done.wait [#allocation2 + $0x4], 16 }
 0x189   : > { %1081 = vsyncadd [#allocation2 + $0x4], 4294967280 }
 0x18a   : > { %1082 = dma.done.wait [#allocation2 + $0x5], 16 }
 0x18b   : > { %1083 = vsyncadd [#allocation2 + $0x5], 4294967280 }
 0x18c   : > { %1084 = dma.done.wait [#allocation2 + $0x6], 16 }
 0x18d   : > { %1085 = vsyncadd [#allocation2 + $0x6], 4294967280 }
 0x18e   : > { %1086 = dma.done.wait [#allocation2 + $0x7], 16 }
 0x18f   : > { %1087 = vsyncadd [#allocation2 + $0x7], 4294967280 }
 0x190   : > { %1088 = dma.done.wait [#allocation2 + $0x8], 16 }
 0x191   : > { %1089 = vsyncadd [#allocation2 + $0x8], 4294967280 }
 0x192   : > { %1090 = dma.done.wait [#allocation2 + $0x9], 16 }
 0x193   : > { %1091 = vsyncadd [#allocation2 + $0x9], 4294967280 }
 0x194   : > { %1092 = dma.done.wait [#allocation2 + $0xa], 16 }
 0x195   : > { %1093 = vsyncadd [#allocation2 + $0xa], 4294967280 }
 0x196   : > { %1094 = dma.done.wait [#allocation2 + $0xb], 16 }
 0x197   : > { %1095 = vsyncadd [#allocation2 + $0xb], 4294967280 }
 0x198   : > { %1096 = dma.done.wait [#allocation2 + $0xc], 16 }
 0x199   : > { %1097 = vsyncadd [#allocation2 + $0xc], 4294967280 }
 0x19a   : > { %1098 = dma.done.wait [#allocation2 + $0xd], 16 }
 0x19b   : > { %1099 = vsyncadd [#allocation2 + $0xd], 4294967280 }
 0x19c   : > { %1100 = dma.done.wait [#allocation2 + $0xe], 16 }
 0x19d   : > { %1101 = vsyncadd [#allocation2 + $0xe], 4294967280 }
 0x19e   : > { %1102 = dma.done.wait [#allocation2 + $0xf], 16 }
 0x19f   : > { %1103 = vsyncadd [#allocation2 + $0xf], 4294967280  ;;  %s601_s24 = sshll.u32 %s1118_s21, 8  ;;  %s1552_s25 = sand.u32 1, %s1114_s20  }
 0x1a0   : > { %s369_s18 = scalar_lea.hbm %s1546_s2, %s601_s24  ;;  %s357_s15 = scalar_lea.sflag [#allocation6], %s1552_s25 }
 0x1a1   : > { %s1030_s0 = scalar_lea.vmem %s1201_s6, 256  ;;  %p1553_p0 = scmp.lt.s32.totalorder %s1201_s6, %s1224_s10 }
 0x1a2   : > { %p1031_p11 = scmp.ne.s32.totalorder %s1201_s6, %s1030_s0  ;;  %p1038_p13 = scmp.lt.s32.totalorder %s1227_s12, %s1030_s0 }
 0x1a4   : > { %p1032_p12 = pnand %p1031_p11, %p1179_p7  ;;  %p1039_p1 = por %p1038_p13, %p1553_p0 }
 0x1a6   : > { %p1033_p5 = pneg %p1032_p12 }
 0x1a8   : > { %p1040_p2 = pnand %p1039_p1, %p1033_p5 }
 0x1aa   : > { %1043 = shalt.err (!%p1040_p2)
}
 0x1ab   : > { %s1044_s9 = scalar_lea.hbm %s369_s18, 256  ;;  %s1048_s8 = scalar_lea.hbm %s1546_s2, 512 }
 0x1ac   : > { %p1045_p3 = scmp.ne.s32.totalorder %s369_s18, %s1044_s9  ;;  %p1049_p8 = scmp.lt.u32.totalorder %s369_s18, %s1546_s2 }
 0x1ad   : > { %p1050_p10 = scmp.lt.u32.totalorder %s1048_s8, %s1044_s9  ;;  %p1052_p12 = scmp.lt.u32.totalorder %s1044_s9, %s369_s18 }
 0x1ae   : > { %p1046_p4 = pnand %p1045_p3, %p1179_p7 }
 0x1af   : > { %p1051_p11 = por %p1050_p10, %p1049_p8 }
 0x1b0   : > { %p1047_p6 = pneg %p1046_p4 }
 0x1b1   : > { %p1053_p13 = por %p1052_p12, %p1051_p11 }
 0x1b3   : > { %p1054_p5 = pnand %p1053_p13, %p1047_p6 }
 0x1b5   : > { %1057 = shalt.err (!%p1054_p5)
}
 0x1b6   : > { %s1122_s10 = smov 128   ;;  %s1123_s12 = smov 8  }
 0x1b7   : > { %602 = dma.vmem_to_hbm [thread:$0]  (%p1179_p7), %s1201_s6, 256, %s369_s18, %s357_s15, %s1122_s10, %s1122_s10, %s1123_s12  }
 0x1b8 PF: > { %p608_p0 = scmp.ge.s32.totalorder %s1118_s21, 1  ;;  %s385_s23 = sand.u32 1, %s1110_s19  }
 0x1b9   : > { %s386_s7 = scalar_lea.sflag [#allocation6], %s385_s23 }
 0x1ba   : > { %p605_p1 = pnand %p608_p0, %p1183_p9 }
 0x1bc   : > { %1105 = dma.done.wait (!%p605_p1), %s386_s7, 256  }
 0x1bd   : > { %1107 = vsyncadd (!%p605_p1), %s386_s7, 4294967040  ;;  %s1554_s4 = sld [smem:[#allocation59_spill]]  ;;  %p16_p2 = scmp.ge.s32.totalorder %s1168_s22, 3  }
 0x1be   : > { %s1555_s19 = smov %s1114_s20  ;;  %s1557_s21 = smov %s1168_s22 }
 0x1bf   :  { %18 = sbr.rel (!%p16_p2) target bundleno = 15 (0xf), region = 169 }
 0x1c3   : > { %s1556_s20 = smov %s1554_s4 }
 0x1c6   :  { %391 = vsyncpa [#allocation6], 1 }
 0x1c7   :  { %393 = vsyncpa [#allocation6 + $0x1], 1 }
 0x1c8   :  { %394 = vsyncmov [#allocation2] }
 0x1cb   :  { %s395_s21 = vpop.sfrf %394 }
 0x1cc   :  { %p585_p7 = scmp.ne.s32.totalorder %s395_s21, 0 }
 0x1ce   :  { %399 = shalt.err (%p585_p7)  }
 0x1cf   :  { %401 = vsyncmov [#allocation2 + $0x1] }
 0x1d2   :  { %s402_s26 = vpop.sfrf %401 }
 0x1d3   :  { %p586_p9 = scmp.ne.s32.totalorder %s402_s26, 0 }
 0x1d5   :  { %406 = shalt.err (%p586_p9)  }
 0x1d6   :  { %408 = vsyncmov [#allocation2 + $0x2] }
 0x1d9   :  { %s409_s27 = vpop.sfrf %408 }
 0x1da   :  { %p587_p3 = scmp.ne.s32.totalorder %s409_s27, 0 }
 0x1dc   :  { %413 = shalt.err (%p587_p3)  }
 0x1dd   :  { %415 = vsyncmov [#allocation2 + $0x3] }
 0x1e0   :  { %s416_s6 = vpop.sfrf %415 }
 0x1e1   :  { %p588_p4 = scmp.ne.s32.totalorder %s416_s6, 0 }
 0x1e3   :  { %420 = shalt.err (%p588_p4)  }
 0x1e4   :  { %422 = vsyncmov [#allocation2 + $0x4] }
 0x1e7   :  { %s423_s22 = vpop.sfrf %422 }
 0x1e8   :  { %p589_p6 = scmp.ne.s32.totalorder %s423_s22, 0 }
 0x1ea   :  { %427 = shalt.err (%p589_p6)  }
 0x1eb   :  { %429 = vsyncmov [#allocation2 + $0x5] }
 0x1ee   :  { %s430_s1 = vpop.sfrf %429 }
 0x1ef   :  { %p590_p8 = scmp.ne.s32.totalorder %s430_s1, 0 }
 0x1f1   :  { %434 = shalt.err (%p590_p8)  }
 0x1f2   :  { %436 = vsyncmov [#allocation2 + $0x6] }
 0x1f5   :  { %s437_s2 = vpop.sfrf %436 }
 0x1f6   :  { %p591_p10 = scmp.ne.s32.totalorder %s437_s2, 0 }
 0x1f8   :  { %441 = shalt.err (%p591_p10)  }
 0x1f9   :  { %443 = vsyncmov [#allocation2 + $0x7] }
 0x1fc   :  { %s444_s19 = vpop.sfrf %443 }
 0x1fd   :  { %p592_p11 = scmp.ne.s32.totalorder %s444_s19, 0 }
 0x1ff   :  { %448 = shalt.err (%p592_p11)  }
 0x200   :  { %450 = vsyncmov [#allocation2 + $0x8] }
 0x203   :  { %s451_s20 = vpop.sfrf %450 }
 0x204   :  { %p593_p12 = scmp.ne.s32.totalorder %s451_s20, 0 }
 0x206   :  { %455 = shalt.err (%p593_p12)  }
 0x207   :  { %457 = vsyncmov [#allocation2 + $0x9] }
 0x20a   :  { %s458_s16 = vpop.sfrf %457 }
 0x20b   :  { %p594_p13 = scmp.ne.s32.totalorder %s458_s16, 0 }
 0x20d   :  { %462 = shalt.err (%p594_p13)  }
 0x20e   :  { %464 = vsyncmov [#allocation2 + $0xa] }
 0x211   :  { %s465_s28 = vpop.sfrf %464 }
 0x212   :  { %p595_p5 = scmp.ne.s32.totalorder %s465_s28, 0 }
 0x214   :  { %469 = shalt.err (%p595_p5)  }
 0x215   :  { %471 = vsyncmov [#allocation2 + $0xb] }
 0x218   :  { %s472_s29 = vpop.sfrf %471 }
 0x219   :  { %p596_p0 = scmp.ne.s32.totalorder %s472_s29, 0 }
 0x21b   :  { %476 = shalt.err (%p596_p0)  }
 0x21c   :  { %478 = vsyncmov [#allocation2 + $0xc] }
 0x21f   :  { %s479_s13 = vpop.sfrf %478 }
 0x220   :  { %p597_p1 = scmp.ne.s32.totalorder %s479_s13, 0 }
 0x222   :  { %483 = shalt.err (%p597_p1)  }
 0x223   :  { %485 = vsyncmov [#allocation2 + $0xd] }
 0x226   :  { %s486_s24 = vpop.sfrf %485 }
 0x227   :  { %p598_p2 = scmp.ne.s32.totalorder %s486_s24, 0 }
 0x229   :  { %490 = shalt.err (%p598_p2)  }
 0x22a   :  { %492 = vsyncmov [#allocation2 + $0xe] }
 0x22d   :  { %s493_s11 = vpop.sfrf %492 }
 0x22e   :  { %p599_p7 = scmp.ne.s32.totalorder %s493_s11, 0 }
 0x230   :  { %497 = shalt.err (%p599_p7)  }
 0x231   :  { %499 = vsyncmov [#allocation2 + $0xf] }
 0x234   :  { %s500_s3 = vpop.sfrf %499 }
 0x235   :  { %p600_p9 = scmp.ne.s32.totalorder %s500_s3, 0 }
 0x237   :  { %504 = shalt.err (%p600_p9)  }

</bundles_post_ra>
